<compile_context>
chip_gen: v7x
topology: tpu7x:2x2x1
jax: 0.10.0
libtpu: 0.0.40
codegen_flags: <defaults>
</compile_context>

<pallas_src>
import functools
import math

import jax
import jax.numpy as jnp
from jax.experimental import pallas as pl
from jax.experimental.pallas import tpu as pltpu

_HP = jax.lax.Precision.HIGHEST  # strict f32 matmuls (PyTorch parity)


def _round_up(n, m):
    return ((n + m - 1) // m) * m


def _rnn_kernel(x_ref, slab_ref, out_ref, *, T, Bp, B, H, O, R0):
    """Single-invocation RNN forward.

    x_ref   : (T*Bp, R0) time-major input, batch padded to Bp rows/step,
              column I holds 1.0 (bias fold), remaining columns are zero.
    slab_ref: (R0 + 2H + 8, H) packed weights:
                rows [0, R0)        : [W_ih^T ; b_ih+b_hh ; 0-pad]
                rows [R0, R0+H)     : W_hh^T
                rows [R0+H, R0+2H)  : W_fc^T (columns O..H-1 zero)
                row  R0+2H          : b_fc   (columns O..H-1 zero)
    out_ref : (B, O)
    """
    # Static, sublane-aligned slices of the weight slab (loaded once).
    wih = slab_ref[0:R0, :]                        # (R0, H)
    whh = slab_ref[R0:R0 + H, :]                   # (H, H)
    wfc = slab_ref[R0 + H:R0 + 2 * H, :]           # (H, H)
    bfc = slab_ref[R0 + 2 * H:R0 + 2 * H + 1, :]   # (1, H)

    # Hoisted batched input projection for ALL timesteps (one MXU matmul);
    # the folded RNN bias is absorbed via the ones column of x.
    proj = jnp.dot(x_ref[...], wih,
                   preferred_element_type=jnp.float32, precision=_HP)

    # Pre-extract the per-step (Bp, H) tiles — each is exactly one sublane
    # tile (t*Bp is a multiple of 8) and independent of h, so this work sits
    # off the serial dependency chain.
    proj_t = [proj[t * Bp:(t + 1) * Bp, :] for t in range(T)]

    # Serial recurrence, fully unrolled (T is static and small): one small
    # matmul + tanh per step, hidden state carried in vregs.
    h = jnp.zeros((Bp, H), jnp.float32)
    for t in range(T):
        h = jnp.tanh(proj_t[t] + jnp.dot(
            h, whh, preferred_element_type=jnp.float32, precision=_HP))

    # Final Linear on the last hidden state, once, after the loop.
    out = jnp.dot(h, wfc, preferred_element_type=jnp.float32,
                  precision=_HP) + bfc
    out_ref[...] = out[:B, :O].astype(out_ref.dtype)


def pack_params(w_ih, w_hh, b_ih, b_hh, w_fc, b_fc):
    """One-time weight relayout (outside the per-forward path).

    Returns a single f32 slab of shape (round_up(I+1,8) + 2H + 8, H) holding
    W_ih^T with the folded RNN bias, W_hh^T, W_fc^T (column padded), and b_fc.
    """
    H, I = w_ih.shape
    O = w_fc.shape[0]
    R0 = _round_up(I + 1, 8)

    blk0 = jnp.zeros((R0, H), jnp.float32)
    blk0 = blk0.at[:I, :].set(jnp.transpose(w_ih).astype(jnp.float32))
    blk0 = blk0.at[I, :].set((b_ih + b_hh).astype(jnp.float32))

    blk1 = jnp.transpose(w_hh).astype(jnp.float32)                  # (H, H)

    blk2 = jnp.zeros((H, H), jnp.float32)
    blk2 = blk2.at[:, :O].set(jnp.transpose(w_fc).astype(jnp.float32))

    blk3 = jnp.zeros((8, H), jnp.float32)
    blk3 = blk3.at[0, :O].set(b_fc.astype(jnp.float32))

    return jnp.concatenate([blk0, blk1, blk2, blk3], axis=0)


def simple_rnn_forward(x, slab, *, hidden_size, output_size):
    """x: (B, T, I) float32 (batch_first). Returns (B, O) float32."""
    B, T, I = x.shape
    H = hidden_size
    O = output_size
    Bp = max(_round_up(B, 8), 8)       # pad batch to one full sublane tile
    R0 = _round_up(I + 1, 8)

    # Per-call input relayout (tiny here; tile with a BlockSpec at scale-up):
    # time-major, ones column (bias fold), zero pad batch -> Bp and cols -> R0.
    x_tm = jnp.transpose(x, (1, 0, 2)).astype(jnp.float32)       # (T, B, I)
    x_aug = jnp.concatenate(
        [x_tm, jnp.ones((T, B, 1), jnp.float32)], axis=-1)       # (T, B, I+1)
    x_aug = jnp.pad(x_aug, ((0, 0), (0, Bp - B), (0, R0 - (I + 1))))
    x_aug = x_aug.reshape(T * Bp, R0)                            # (T*Bp, R0)

    kernel = functools.partial(_rnn_kernel, T=T, Bp=Bp, B=B, H=H, O=O, R0=R0)
    vmem = pl.BlockSpec(memory_space=pltpu.MemorySpace.VMEM)

    return pl.pallas_call(
        kernel,
        out_shape=jax.ShapeDtypeStruct((B, O), jnp.float32),
        in_specs=[vmem, vmem],
        out_specs=vmem,
    )(x_aug, slab)


def reference_forward(x, w_ih, w_hh, b_ih, b_hh, w_fc, b_fc):
    """Pure-JAX reference matching torch.nn.RNN(batch_first=True) + Linear."""
    B, T, I = x.shape
    H = w_ih.shape[0]
    h = jnp.zeros((B, H), jnp.float32)
    for t in range(T):
        h = jnp.tanh(jnp.dot(x[:, t, :], w_ih.T, precision=_HP) + b_ih
                     + jnp.dot(h, w_hh.T, precision=_HP) + b_hh)
    return jnp.dot(h, w_fc.T, precision=_HP) + b_fc


if __name__ == "__main__":
    # Small shapes consistent with the module's forward.
    batch = 2
    seq = 8
    input_size = 16
    hidden_size = 64
    output_size = 4

    key = jax.random.PRNGKey(0)
    kx, k1, k2, k3, k4, k5, k6 = jax.random.split(key, 7)

    x = jax.random.normal(kx, (batch, seq, input_size), dtype=jnp.float32)

    # Deterministic init mimicking PyTorch's U(-1/sqrt(H), 1/sqrt(H)).
    bound = 1.0 / math.sqrt(hidden_size)
    w_ih = jax.random.uniform(k1, (hidden_size, input_size), jnp.float32,
                              -bound, bound)
    w_hh = jax.random.uniform(k2, (hidden_size, hidden_size), jnp.float32,
                              -bound, bound)
    b_ih = jax.random.uniform(k3, (hidden_size,), jnp.float32, -bound, bound)
    b_hh = jax.random.uniform(k4, (hidden_size,), jnp.float32, -bound, bound)
    w_fc = jax.random.uniform(k5, (output_size, hidden_size), jnp.float32,
                              -bound, bound)
    b_fc = jax.random.uniform(k6, (output_size,), jnp.float32, -bound, bound)

    # One-time weight packing (analogous to module construction).
    slab = jax.block_until_ready(
        pack_params(w_ih, w_hh, b_ih, b_hh, w_fc, b_fc))

    forward = jax.jit(functools.partial(
        simple_rnn_forward, hidden_size=hidden_size, output_size=output_size))
    out = forward(x, slab)
    out = jax.block_until_ready(out)

    ref = reference_forward(x, w_ih, w_hh, b_ih, b_hh, w_fc, b_fc)
    assert out.shape == (batch, output_size)
    assert jnp.allclose(out, ref, atol=1e-4, rtol=1e-4), (out, ref)

    print("KERNEL_OK")
</pallas_src>

<mosaic_0001>
module attributes {stable_mosaic.version = 11 : i64} {
  func.func @_rnn_kernel(%arg0: memref<64x24xf32, #tpu.memory_space<vmem>>, %arg1: memref<160x64xf32, #tpu.memory_space<vmem>>, %arg2: memref<2x4xf32, #tpu.memory_space<vmem>>) attributes {dimension_semantics = [], scalar_prefetch = 0 : i64, scratch_operands = 0 : i64, tpu.core_type = #tpu.core_type<tc>} {
    %c0 = arith.constant 0 : index
    %c0_0 = arith.constant 0 : index
    %0 = vector.load %arg1[%c0, %c0_0] : memref<160x64xf32, #tpu.memory_space<vmem>>, vector<24x64xf32>
    %c24 = arith.constant 24 : index
    %c0_1 = arith.constant 0 : index
    %1 = vector.load %arg1[%c24, %c0_1] : memref<160x64xf32, #tpu.memory_space<vmem>>, vector<64x64xf32>
    %c88 = arith.constant 88 : index
    %c0_2 = arith.constant 0 : index
    %2 = vector.load %arg1[%c88, %c0_2] : memref<160x64xf32, #tpu.memory_space<vmem>>, vector<64x64xf32>
    %c152 = arith.constant 152 : index
    %c0_3 = arith.constant 0 : index
    %3 = vector.load %arg1[%c152, %c0_3] : memref<160x64xf32, #tpu.memory_space<vmem>>, vector<1x64xf32>
    %c0_4 = arith.constant 0 : index
    %c0_5 = arith.constant 0 : index
    %4 = vector.load %arg0[%c0_4, %c0_5] : memref<64x24xf32, #tpu.memory_space<vmem>>, vector<64x24xf32>
    %cst = arith.constant dense<0.000000e+00> : vector<64x64xf32>
    %5 = tpu.matmul %4, %0, %cst {dimension_numbers = #tpu.dot_dimension_numbers<[1], [0], [0], [1], [0, 0, 1, 1], [], []>, precision = #tpu.contract_precision<fp32>} : vector<64x24xf32>, vector<24x64xf32>, vector<64x64xf32> -> vector<64x64xf32>
    %6 = vector.extract_strided_slice %5 {offsets = [0, 0], sizes = [8, 64], strides = [1, 1]} : vector<64x64xf32> to vector<8x64xf32>
    %7 = vector.extract_strided_slice %5 {offsets = [8, 0], sizes = [8, 64], strides = [1, 1]} : vector<64x64xf32> to vector<8x64xf32>
    %8 = vector.extract_strided_slice %5 {offsets = [16, 0], sizes = [8, 64], strides = [1, 1]} : vector<64x64xf32> to vector<8x64xf32>
    %9 = vector.extract_strided_slice %5 {offsets = [24, 0], sizes = [8, 64], strides = [1, 1]} : vector<64x64xf32> to vector<8x64xf32>
    %10 = vector.extract_strided_slice %5 {offsets = [32, 0], sizes = [8, 64], strides = [1, 1]} : vector<64x64xf32> to vector<8x64xf32>
    %11 = vector.extract_strided_slice %5 {offsets = [40, 0], sizes = [8, 64], strides = [1, 1]} : vector<64x64xf32> to vector<8x64xf32>
    %12 = vector.extract_strided_slice %5 {offsets = [48, 0], sizes = [8, 64], strides = [1, 1]} : vector<64x64xf32> to vector<8x64xf32>
    %13 = vector.extract_strided_slice %5 {offsets = [56, 0], sizes = [8, 64], strides = [1, 1]} : vector<64x64xf32> to vector<8x64xf32>
    %cst_6 = arith.constant 0.000000e+00 : f32
    %14 = vector.broadcast %cst_6 : f32 to vector<8x64xf32>
    %cst_7 = arith.constant dense<0.000000e+00> : vector<8x64xf32>
    %15 = tpu.matmul %14, %1, %cst_7 {dimension_numbers = #tpu.dot_dimension_numbers<[1], [0], [0], [1], [0, 0, 1, 1], [], []>, precision = #tpu.contract_precision<fp32>} : vector<8x64xf32>, vector<64x64xf32>, vector<8x64xf32> -> vector<8x64xf32>
    %16 = arith.addf %6, %15 : vector<8x64xf32>
    %17 = math.tanh %16 : vector<8x64xf32>
    %cst_8 = arith.constant dense<0.000000e+00> : vector<8x64xf32>
    %18 = tpu.matmul %17, %1, %cst_8 {dimension_numbers = #tpu.dot_dimension_numbers<[1], [0], [0], [1], [0, 0, 1, 1], [], []>, precision = #tpu.contract_precision<fp32>} : vector<8x64xf32>, vector<64x64xf32>, vector<8x64xf32> -> vector<8x64xf32>
    %19 = arith.addf %7, %18 : vector<8x64xf32>
    %20 = math.tanh %19 : vector<8x64xf32>
    %cst_9 = arith.constant dense<0.000000e+00> : vector<8x64xf32>
    %21 = tpu.matmul %20, %1, %cst_9 {dimension_numbers = #tpu.dot_dimension_numbers<[1], [0], [0], [1], [0, 0, 1, 1], [], []>, precision = #tpu.contract_precision<fp32>} : vector<8x64xf32>, vector<64x64xf32>, vector<8x64xf32> -> vector<8x64xf32>
    %22 = arith.addf %8, %21 : vector<8x64xf32>
    %23 = math.tanh %22 : vector<8x64xf32>
    %cst_10 = arith.constant dense<0.000000e+00> : vector<8x64xf32>
    %24 = tpu.matmul %23, %1, %cst_10 {dimension_numbers = #tpu.dot_dimension_numbers<[1], [0], [0], [1], [0, 0, 1, 1], [], []>, precision = #tpu.contract_precision<fp32>} : vector<8x64xf32>, vector<64x64xf32>, vector<8x64xf32> -> vector<8x64xf32>
    %25 = arith.addf %9, %24 : vector<8x64xf32>
    %26 = math.tanh %25 : vector<8x64xf32>
    %cst_11 = arith.constant dense<0.000000e+00> : vector<8x64xf32>
    %27 = tpu.matmul %26, %1, %cst_11 {dimension_numbers = #tpu.dot_dimension_numbers<[1], [0], [0], [1], [0, 0, 1, 1], [], []>, precision = #tpu.contract_precision<fp32>} : vector<8x64xf32>, vector<64x64xf32>, vector<8x64xf32> -> vector<8x64xf32>
    %28 = arith.addf %10, %27 : vector<8x64xf32>
    %29 = math.tanh %28 : vector<8x64xf32>
    %cst_12 = arith.constant dense<0.000000e+00> : vector<8x64xf32>
    %30 = tpu.matmul %29, %1, %cst_12 {dimension_numbers = #tpu.dot_dimension_numbers<[1], [0], [0], [1], [0, 0, 1, 1], [], []>, precision = #tpu.contract_precision<fp32>} : vector<8x64xf32>, vector<64x64xf32>, vector<8x64xf32> -> vector<8x64xf32>
    %31 = arith.addf %11, %30 : vector<8x64xf32>
    %32 = math.tanh %31 : vector<8x64xf32>
    %cst_13 = arith.constant dense<0.000000e+00> : vector<8x64xf32>
    %33 = tpu.matmul %32, %1, %cst_13 {dimension_numbers = #tpu.dot_dimension_numbers<[1], [0], [0], [1], [0, 0, 1, 1], [], []>, precision = #tpu.contract_precision<fp32>} : vector<8x64xf32>, vector<64x64xf32>, vector<8x64xf32> -> vector<8x64xf32>
    %34 = arith.addf %12, %33 : vector<8x64xf32>
    %35 = math.tanh %34 : vector<8x64xf32>
    %cst_14 = arith.constant dense<0.000000e+00> : vector<8x64xf32>
    %36 = tpu.matmul %35, %1, %cst_14 {dimension_numbers = #tpu.dot_dimension_numbers<[1], [0], [0], [1], [0, 0, 1, 1], [], []>, precision = #tpu.contract_precision<fp32>} : vector<8x64xf32>, vector<64x64xf32>, vector<8x64xf32> -> vector<8x64xf32>
    %37 = arith.addf %13, %36 : vector<8x64xf32>
    %38 = math.tanh %37 : vector<8x64xf32>
    %cst_15 = arith.constant dense<0.000000e+00> : vector<8x64xf32>
    %39 = tpu.matmul %38, %2, %cst_15 {dimension_numbers = #tpu.dot_dimension_numbers<[1], [0], [0], [1], [0, 0, 1, 1], [], []>, precision = #tpu.contract_precision<fp32>} : vector<8x64xf32>, vector<64x64xf32>, vector<8x64xf32> -> vector<8x64xf32>
    %40 = vector.broadcast %3 : vector<1x64xf32> to vector<8x64xf32>
    %41 = arith.addf %39, %40 : vector<8x64xf32>
    %42 = vector.extract_strided_slice %41 {offsets = [0, 0], sizes = [2, 4], strides = [1, 1]} : vector<8x64xf32> to vector<2x4xf32>
    %c0_16 = arith.constant 0 : index
    %c0_17 = arith.constant 0 : index
    %43 = vector.load %arg2[%c0_16, %c0_17] : memref<2x4xf32, #tpu.memory_space<vmem>>, vector<2x4xf32>
    tpu.vector_store %arg2[%c0_16, %c0_17], %42 {strides = array<i32>} : memref<2x4xf32, #tpu.memory_space<vmem>>, vector<2x4xf32>,
    return
  }
}

</mosaic_0001>

<bundles_post_ra>
// kernel: simple_rnn_forward.1
= control target key start
LH: loop header
LB: loop body
LE: loop exit
PB: predicated region body
PF: predicated region fallthrough
CT: control target
= control target key end

     0   :  { %vm40_vm0 = vcmask 195584   ;;  %v8269_v3 = vmov 0.0|0.0   ;;  %s9335_s0 = inlined_call_operand.vmem [shape: f32[64,24], index: 0, kind: input, shape index: {}]   ;;  %s9336_s1 = inlined_call_operand.vmem [shape: f32[160,64], index: 1, kind: input, shape index: {}]   ;;  %s9337_s2 = inlined_call_operand.hbm [shape: f32[2,4], index: 2, kind: output, shape index: {}]  }
   0x1   :  { %v8291_v0 = vld [vmem:[%s9336_s1 + $0x18] sm:$0xff]  ;;  %v8296_v1 = vld [vmem:[%s9336_s1 + $0x20] sm:$0xff]  ;;  %7446 = vmatprep.subr.bf16.mxu1 %v8269_v3  ;;  %v13_v6 = vld [vmem:[%s9336_s1 + $0x8] sm:$0xff] }
   0x2   :  { %v12_v2 = vld [vmem:[%s9336_s1] sm:$0xff]  ;;  %v843_v4 = vand.u32 4294901760, %v8291_v0  ;;  %v846_v5 = vand.u32 4294901760, %v8296_v1  ;;  %v8310_v8 = vld [vmem:[%s9336_s1 + $0x28] sm:$0xff]  ;;  %v8315_v9 = vld [vmem:[%s9336_s1 + $0x30] sm:$0xff]  ;;  %v69_v10 = vand.u32 4294901760, %v13_v6 }
   0x3   :  { %v66_v7 = vand.u32 4294901760, %v12_v2  ;;  %v849_v11 = vand.u32 4294901760, %v8310_v8  ;;  %v852_v12 = vand.u32 4294901760, %v8315_v9  ;;  %v8322_v13 = vld [vmem:[%s9336_s1 + $0x10] sm:$0xff]  ;;  %v32_v14 = vld [vmem:[%s9335_s0] sm:$0xff]  ;;  %v33_v15 = vld [vmem:[%s9335_s0 + $0x8] sm:$0xff] }
   0x4   :  { %v8334_v16 = vpack.c.bf16 %v846_v5, %v843_v4  ;;  %v8337_v17 = vand.u32 4294901760, %v8322_v13  ;;  %v42_v18 = vsel %vm40_vm0, %v32_v14, 0  ;;  %v45_v19 = vsel %vm40_vm0, %v33_v15, 0  ;;  %v8344_v20 = vld [vmem:[%s9336_s1 + $0x38] sm:$0xff]  ;;  %v8349_v21 = vld [vmem:[%s9336_s1 + $0x40] sm:$0xff]  ;;  %v34_v22 = vld [vmem:[%s9335_s0 + $0x10] sm:$0xff] }
   0x5   :  { %v8354_v23 = vpack.c.bf16 %v69_v10, %v66_v7  ;;  %v8360_v24 = vpack.c.bf16 %v852_v12, %v849_v11  ;;  %v8362_v25 = vand.u32 4294901760, %v42_v18  ;;  %v8364_v26 = vand.u32 4294901760, %v45_v19  ;;  %v35_v27 = vld [vmem:[%s9335_s0 + $0x18] sm:$0xff]  ;;  %v8372_v28 = vld [vmem:[%s9336_s1 + $0x48] sm:$0xff]  ;;  %v8377_v29 = vld [vmem:[%s9336_s1 + $0x50] sm:$0xff] }
   0x6   :  { %7448 = vmatpush3.bf16.msra.mxu1 %v8334_v16  ;;  %v855_v30 = vand.u32 4294901760, %v8344_v20  ;;  %v858_v31 = vand.u32 4294901760, %v8349_v21  ;;  %v48_v32 = vsel %vm40_vm0, %v34_v22, 0  ;;  %v51_v33 = vsel %vm40_vm0, %v35_v27, 0  ;;  %v36_v38 = vld [vmem:[%s9335_s0 + $0x20] sm:$0xff] }
   0x7   :  { %7423 = vmatprep.subr.bf16.mxu0 %v8354_v23  ;;  %7449 = vmatprep.subr.bf16.mxu1 %v8269_v3  ;;  %v8387_v34 = vsub.f32 %v42_v18, %v8362_v25  ;;  %v8390_v35 = vsub.f32 %v45_v19, %v8364_v26  ;;  %v8392_v36 = vand.u32 4294901760, %v48_v32  ;;  %v8394_v37 = vand.u32 4294901760, %v51_v33 }
   0x8   :  { %7 = vsyncpa [#allocation3], 0  ;;  %7425 = vmatpush3.bf16.msra.mxu0 %v8354_v23  ;;  %v8404_v39 = vpack.c.bf16 %v858_v31, %v855_v30  ;;  %v861_v40 = vand.u32 4294901760, %v8372_v28  ;;  %v864_v41 = vand.u32 4294901760, %v8377_v29  ;;  %v8408_v42 = vsub.f32 %v12_v2, %v66_v7  ;;  %v37_v55 = vld [vmem:[%s9335_s0 + $0x28] sm:$0xff]  ;;  %v38_v2 = vld [vmem:[%s9335_s0 + $0x30] sm:$0xff] }
   0x9   :  { %6292 = vmatprep.subr.mxu0 %v8337_v17  ;;  %v135_v43 = vand.u32 4294901760, %v8387_v34  ;;  %v145_v44 = vand.u32 4294901760, %v8390_v35  ;;  %v8414_v45 = vsub.f32 %v48_v32, %v8392_v36  ;;  %v8417_v46 = vsub.f32 %v51_v33, %v8394_v37  ;;  %v39_v15 = vld [vmem:[%s9335_s0 + $0x38] sm:$0xff]  ;;  %s8272_s8 = smov [#allocation2]  }
   0xa   :  { %7451 = vmatpush3.bf16.msra.mxu1 %v8360_v24  ;;  %v8424_v47 = vpack.c.bf16 %v864_v41, %v861_v40  ;;  %v216_v48 = vand.u32 4294901760, %v8408_v42  ;;  %v8427_v49 = vsub.f32 %v13_v6, %v69_v10  ;;  %v54_v50 = vsel %vm40_vm0, %v36_v38, 0  ;;  %s5727_s9 = sshll.u32 %s8272_s8, 4  ;;  %s5728_s9 = int_to_ptr.vmem [resolvable:$true] %s5727_s9 }
   0xb   :  { %v136_v51 = vsub.f32 %v8387_v34, %v135_v43  ;;  %7452 = vmatprep.subr.bf16.mxu1 %v8269_v3  ;;  %v146_v52 = vsub.f32 %v8390_v35, %v145_v44  ;;  %v155_v53 = vand.u32 4294901760, %v8414_v45  ;;  %v165_v54 = vand.u32 4294901760, %v8417_v46  ;;  %s8245_s10 = scalar_lea.vmem %s5728_s9, 32  ;;  %p8250_p1 = scmp.lt.s32.totalorder %s5728_s9, %s5728_s9 }
   0xc   :  { %6293 = vmatpush3.msra.mxu0 %v8337_v17  ;;  %v217_v56 = vsub.f32 %v8408_v42, %v216_v48  ;;  %v223_v57 = vand.u32 4294901760, %v8427_v49  ;;  %v8447_v58 = vand.u32 4294901760, %v54_v50  ;;  %vm8270_vm1 = vmmov 0   ;;  %p8246_p0 = scmp.ne.s32.totalorder %s5728_s9, %s8245_s10  ;;  %p8251_p2 = scmp.lt.s32.totalorder %s8245_s10, %s8245_s10 }
   0xd   :  { %v137_v59 = vand.u32 4294901760, %v136_v51  ;;  %v147_v60 = vand.u32 4294901760, %v146_v52  ;;  %v156_v61 = vsub.f32 %v8414_v45, %v155_v53  ;;  %v166_v62 = vsub.f32 %v8417_v46, %v165_v54 }
   0xe   :  { %v8271_v63 = vmov 0.0   ;;  %7454 = vmatpush3.bf16.msra.mxu1 %v8404_v39  ;;  %v218_v6 = vand.u32 4294901760, %v217_v56  ;;  %v224_v7 = vsub.f32 %v8427_v49, %v223_v57  ;;  %v8465_v10 = vsub.f32 %v54_v50, %v8447_v58  ;;  %p8252_p3 = por %p8251_p2, %p8250_p1 }
   0xf   :  { %6412 = vmatprep.mubr.msk.f32.mxu1 %vm8270_vm1, %v8271_v63  ;;  %v57_v14 = vsel %vm40_vm0, %v37_v55, 0  ;;  %6294 = vmatprep.mubr.f32.mxu0 %v137_v59  ;;  %v157_v18 = vand.u32 4294901760, %v156_v61  ;;  %v167_v19 = vand.u32 4294901760, %v166_v62  ;;  %v8477_v27 = vsub.f32 %v8291_v0, %v843_v4 }
  0x10   :  { %7455 = vmatprep.subr.bf16.mxu1 %v8269_v3  ;;  %v8472_v22 = vand.u32 4294901760, %v57_v14  ;;  %6295 = vmatmul.mubr.f32.vlgmr.msra.gmra.mrb[0].mxu0 %v147_v60  ;;  %v225_v32 = vand.u32 4294901760, %v224_v7  ;;  %v175_v33 = vand.u32 4294901760, %v8465_v10  ;;  %v8483_v38 = vsub.f32 %v8296_v1, %v846_v5  ;;  %p8253_p4 = pnand %p8252_p3, %p8246_p0 }
  0x11   :  { %v60_v50 = vsel %vm40_vm0, %v38_v2, 0  ;;  %6297 = vmatprep.mubr.f32.mxu0 %v157_v18  ;;  %v928_v52 = vand.u32 4294901760, %v8477_v27  ;;  %v63_v0 = vsel %vm40_vm0, %v39_v15, 0  ;;  %v8511_v62 = vsub.f32 %v8310_v8, %v849_v11 }
  0x12   :  { %v8487_v51 = vsub.f32 %v57_v14, %v8472_v22  ;;  %v8490_v55 = vand.u32 4294901760, %v60_v50  ;;  %7457 = vmatpush3.bf16.msra.mxu1 %v8424_v47  ;;  %v7426_v4 = vpack.c.bf16 %v225_v32, %v218_v6  ;;  %v176_v1 = vsub.f32 %v8465_v10, %v175_v33 }
  0x13   :  { %v935_v5 = vand.u32 4294901760, %v8483_v38  ;;  %v8498_v56 = vand.u32 4294901760, %v63_v0  ;;  %7458 = vmatprep.subr.bf16.mxu1 %v8269_v3  ;;  %v929_v60 = vsub.f32 %v8477_v27, %v928_v52  ;;  %v8522_v14 = vsub.f32 %v8315_v9, %v852_v12 }
  0x14   :  { %v185_v59 = vand.u32 4294901760, %v8487_v51  ;;  %v8506_v61 = vsub.f32 %v60_v50, %v8490_v55  ;;  %6298 = vmatmul.mubr.f32.gmra.mrb[2].mxu0 %v167_v19  ;;  %7427 = vmatprep.subr.bf16.mxu0 %v7426_v4  ;;  %v177_v2 = vand.u32 4294901760, %v176_v1  ;;  %v9338_v18 = vand.u32 4294901760, %v8511_v62 }
  0x15   :  { %v936_v6 = vsub.f32 %v8483_v38, %v935_v5  ;;  %v8517_v7 = vsub.f32 %v63_v0, %v8498_v56  ;;  %7429 = vmatpush3.bf16.msra.mxu0 %v7426_v4  ;;  %6413 = vmatmul.mubr.f32.vlgmr.msra.gmra.mrb[0].mxu1 %v8271_v63  ;;  %v930_v11 = vand.u32 4294901760, %v929_v60  ;;  %v949_v50 = vand.u32 4294901760, %v8522_v14 }
  0x16   :  { %v186_v8 = vsub.f32 %v8487_v51, %v185_v59  ;;  %v9339_v15 = vand.u32 4294901760, %v8506_v61  ;;  %6300 = vmatprep.mubr.f32.mxu0 %v177_v2  ;;  %v229_v9 = vsub.f32 %v8322_v13, %v8337_v17  ;;  %6431 = vmatprep.mubr.msk.f32.mxu1 %vm8270_vm1, %v8271_v63  ;;  %v943_v4 = vsub.f32 %v8511_v62, %v9338_v18 }
  0x17   :  { %v937_v19 = vand.u32 4294901760, %v936_v6  ;;  %v9340_v32 = vand.u32 4294901760, %v8517_v7  ;;  %v8545_v1 = vsub.f32 %v8344_v20, %v855_v30  ;;  %v950_v2 = vsub.f32 %v8522_v14, %v949_v50 }
  0x18   :  { %v187_v12 = vand.u32 4294901760, %v186_v8  ;;  %v196_v0 = vsub.f32 %v8506_v61, %v9339_v15  ;;  %v8555_v6 = vand.u32 4294901760, %v229_v9  ;;  %v944_v18 = vand.u32 4294901760, %v943_v4 }
  0x19   :  { %v8547_v60 = vpack.c.bf16 %v937_v19, %v930_v11  ;;  %v206_v13 = vsub.f32 %v8517_v7, %v9340_v32  ;;  %v956_v15 = vand.u32 4294901760, %v8545_v1  ;;  %v8561_v20 = vsub.f32 %v8349_v21, %v858_v31 }
  0x1a   :  { %6301 = vmatmul.mubr.f32.gmra.mrb[4].mxu0 %v187_v12  ;;  %v197_v8 = vand.u32 4294901760, %v196_v0  ;;  %v951_v11 = vand.u32 4294901760, %v950_v2  ;;  %v231_v19 = vsub.f32 %v229_v9, %v8555_v6  ;;  %v8568_v32 = vsub.f32 %v8372_v28, %v861_v40 }
  0x1b   :  { %7460 = vmatpush3.bf16.msra.mxu1 %v8547_v60  ;;  %v207_v30 = vand.u32 4294901760, %v206_v13  ;;  %v957_v12 = vsub.f32 %v8545_v1, %v956_v15  ;;  %v963_v21 = vand.u32 4294901760, %v8561_v20  ;;  %v8578_v31 = vsub.f32 %v8377_v29, %v864_v41 }
  0x1c   :  { %6303 = vmatprep.mubr.f32.mxu0 %v197_v8  ;;  %7461 = vmatprep.subr.bf16.mxu1 %v8269_v3  ;;  %v8580_v0 = vpack.c.bf16 %v951_v11, %v944_v18  ;;  %v232_v4 = vand.u32 4294901760, %v231_v19  ;;  %v970_v28 = vand.u32 4294901760, %v8568_v32  ;;  %v7430_v40 = vpack.c.bf16 %v8427_v49, %v8408_v42 }
  0x1d   :  { %v958_v13 = vand.u32 4294901760, %v957_v12  ;;  %v964_v2 = vsub.f32 %v8561_v20, %v963_v21  ;;  %v977_v8 = vand.u32 4294901760, %v8578_v31  ;;  %v9342_v42 = vand.u32 4294901760, %v8511_v62 }
  0x1e   :  { %6304 = vmatmul.mubr.f32.gmra.mrb[6].mxu0 %v207_v30  ;;  %6310 = vmatprep.subr.mxu0 %v232_v4  ;;  %v971_v29 = vsub.f32 %v8568_v32, %v970_v28  ;;  %vm838_vm2 = vcmask 523264   ;;  %vm5719_vm3 = vcmask 25600  }
  0x1f   :  { %7463 = vmatpush3.bf16.msra.mxu1 %v8580_v0  ;;  %6311 = vmatpush3.msra.mxu0 %v232_v4  ;;  %v965_v41 = vand.u32 4294901760, %v964_v2  ;;  %v978_v18 = vsub.f32 %v8578_v31, %v977_v8  ;;  %v8611_v4 = vpack.c.bf16 %v8483_v38, %v8477_v27  ;;  %v7438_v2 = vpack.c.bf16 %v223_v57, %v216_v48 }
  0x20   :  { %6312 = vmatprep.mubr.f32.mxu0 %v8362_v25  ;;  %7464 = vmatprep.subr.bf16.mxu1 %v8269_v3  ;;  %v972_v30 = vand.u32 4294901760, %v971_v29 }
  0x21   :  { %7431 = vmatprep.subr.bf16.mxu0 %v7430_v40  ;;  %v8599_v11 = vpack.c.bf16 %v965_v41, %v958_v13  ;;  %v979_v19 = vand.u32 4294901760, %v978_v18  ;;  %v8640_v13 = vpack.c.bf16 %v8578_v31, %v8568_v32 }
  0x22   :  { %6313 = vmatmul.mubr.f32.vlgmr.msra.gmra.mrb[0].mxu0 %v8364_v26 }
  0x23   :  { %6315 = vmatprep.mubr.f32.mxu0 %v8392_v36  ;;  %7433 = vmatpush3.bf16.msra.mxu0 %v7430_v40  ;;  %v8603_v12 = vpack.c.bf16 %v979_v19, %v972_v30  ;;  %v8631_v40 = vpack.c.bf16 %v8561_v20, %v8545_v1 }
  0x24   :  { %7466 = vmatpush3.bf16.msra.mxu1 %v8599_v11  ;;  %6328 = vmatprep.subr.mxu0 %v229_v9 }
  0x25   :  { %7467 = vmatprep.subr.bf16.mxu1 %v8269_v3 }
  0x26   :  { %6316 = vmatmul.mubr.f32.gmra.mrb[2].mxu0 %v8394_v37 }
  0x27   :  { %6318 = vmatprep.mubr.f32.mxu0 %v8447_v58  ;;  %6329 = vmatpush3.msra.mxu0 %v229_v9  ;;  %v8621_v9 = vpack.c.bf16 %v8522_v14, %v8511_v62 }
  0x28   :  { %7469 = vmatpush3.bf16.msra.mxu1 %v8603_v12  ;;  %7435 = vmatprep.subr.bf16.mxu0 %v8354_v23 }
  0x29   :  { %7470 = vmatprep.subr.bf16.mxu1 %v8269_v3 }
  0x2a   :  { %6319 = vmatmul.mubr.f32.gmra.mrb[4].mxu0 %v8472_v22 }
  0x2b   :  { %6432 = vmatmul.mubr.f32.vlgmr.msra.gmra.mrb[0].mxu1 %v8271_v63  ;;  %6321 = vmatprep.mubr.f32.mxu0 %v8490_v55 }
  0x2c   :  { %7472 = vmatpush3.bf16.msra.mxu1 %v8611_v4  ;;  %6450 = vmatprep.mubr.msk.f32.mxu1 %vm8270_vm1, %v8271_v63 }
  0x2d   :  { %7473 = vmatprep.subr.bf16.mxu1 %v8269_v3 }
  0x2e   :  { %6322 = vmatmul.mubr.f32.gmra.mrb[6].mxu0 %v8498_v56 }
  0x2f   :  { %6330 = vmatprep.mubr.f32.mxu0 %v8387_v34  ;;  %v8682_v34 = vpack.c.bf16 %v935_v5, %v928_v52 }
  0x30   :  { %7475 = vmatpush3.bf16.msra.mxu1 %v8621_v9 }
  0x31   :  { %7476 = vmatprep.subr.bf16.mxu1 %v8269_v3 }
  0x32   :  { %6331 = vmatmul.mubr.f32.vlgmr.msra.gmra.mrb[0].mxu0 %v8390_v35  ;;  %v9341_v35 = vand.u32 4294901760, %v8506_v61 }
  0x33   :  { %6333 = vmatprep.mubr.f32.mxu0 %v8414_v45  ;;  %7437 = vmatpush3.bf16.msra.mxu0 %v8354_v23  ;;  %v8709_v45 = vpack.c.bf16 %v963_v21, %v956_v15 }
  0x34   :  { %7478 = vmatpush3.bf16.msra.mxu1 %v8631_v40  ;;  %6346 = vmatprep.subr.mxu0 %v8337_v17 }
  0x35   :  { %7479 = vmatprep.subr.bf16.mxu1 %v8269_v3 }
  0x36   :  { %6334 = vmatmul.mubr.f32.gmra.mrb[2].mxu0 %v8417_v46  ;;  %v8720_v46 = vpack.c.bf16 %v977_v8, %v970_v28 }
  0x37   :  { %6336 = vmatprep.mubr.f32.mxu0 %v8465_v10  ;;  %6347 = vmatpush3.msra.mxu0 %v8337_v17 }
  0x38   :  { %7481 = vmatpush3.bf16.msra.mxu1 %v8640_v13  ;;  %7439 = vmatprep.subr.bf16.mxu0 %v7438_v2 }
  0x39   :  { %7482 = vmatprep.subr.bf16.mxu1 %v8269_v3 }
  0x3a   :  { %6337 = vmatmul.mubr.f32.gmra.mrb[4].mxu0 %v8487_v51 }
  0x3b   :  { %6451 = vmatmul.mubr.f32.vlgmr.msra.gmra.mrb[0].mxu1 %v8271_v63  ;;  %6339 = vmatprep.mubr.f32.mxu0 %v8506_v61 }
  0x3c   :  { %7484 = vmatpush3.bf16.msra.mxu1 %v8334_v16  ;;  %6469 = vmatprep.mubr.msk.f32.mxu1 %vm8270_vm1, %v8271_v63 }
  0x3d   :  { %7485 = vmatprep.subr.bf16.mxu1 %v8269_v3 }
  0x3e   :  { %6340 = vmatmul.mubr.f32.gmra.mrb[6].mxu0 %v8517_v7 }
  0x3f   :  { %6348 = vmatprep.mubr.f32.mxu0 %v135_v43  ;;  %v8696_v43 = vpack.c.bf16 %v949_v50, %v9342_v42 }
  0x40   :  { %7487 = vmatpush3.bf16.msra.mxu1 %v8360_v24 }
  0x41   :  { %7488 = vmatprep.subr.bf16.mxu1 %v8269_v3 }
  0x42   :  { %6349 = vmatmul.mubr.f32.vlgmr.msra.gmra.mrb[0].mxu0 %v145_v44  ;;  %v9343_v44 = vand.u32 4294901760, %v8517_v7 }
  0x43   :  { %6351 = vmatprep.mubr.f32.mxu0 %v155_v53  ;;  %7441 = vmatpush3.bf16.msra.mxu0 %v7438_v2 }
  0x44   :  { %7490 = vmatpush3.bf16.msra.mxu1 %v8404_v39  ;;  %6364 = vmatprep.subr.mxu0 %v8555_v6 }
  0x45   :  { %7491 = vmatprep.subr.bf16.mxu1 %v8269_v3 }
  0x46   :  { %6352 = vmatmul.mubr.f32.gmra.mrb[2].mxu0 %v165_v54 }
  0x47   :  { %6354 = vmatprep.mubr.f32.mxu0 %v175_v33  ;;  %6365 = vmatpush3.msra.mxu0 %v8555_v6 }
  0x48   :  { %7493 = vmatpush3.bf16.msra.mxu1 %v8424_v47  ;;  %7443 = vmatprep.subr.bf16.mxu0 %v8354_v23 }
  0x49   :  { %7494 = vmatprep.subr.bf16.mxu1 %v8269_v3 }
  0x4a   :  { %6355 = vmatmul.mubr.f32.gmra.mrb[4].mxu0 %v185_v59 }
  0x4b   :  { %6470 = vmatmul.mubr.f32.vlgmr.msra.gmra.mrb[0].mxu1 %v8271_v63  ;;  %6357 = vmatprep.mubr.f32.mxu0 %v9341_v35 }
  0x4c   :  { %7496 = vmatpush3.bf16.msra.mxu1 %v8682_v34  ;;  %6488 = vmatprep.mubr.msk.f32.mxu1 %vm8270_vm1, %v8271_v63 }
  0x4d   :  { %7497 = vmatprep.subr.bf16.mxu1 %v8269_v3 }
  0x4e   :  { %6358 = vmatmul.mubr.f32.gmra.mrb[6].mxu0 %v9343_v44 }
  0x4f   :  { %6366 = vmatprep.mubr.f32.mxu0 %v8362_v25 }
  0x50   :  { %7499 = vmatpush3.bf16.msra.mxu1 %v8696_v43 }
  0x51   :  { %7500 = vmatprep.subr.bf16.mxu1 %v8269_v3 }
  0x52   :  { %6367 = vmatmul.mubr.f32.vlgmr.msra.gmra.mrb[0].mxu0 %v8364_v26 }
  0x53   :  { %6369 = vmatprep.mubr.f32.mxu0 %v8392_v36  ;;  %7445 = vmatpush3.bf16.msra.mxu0 %v8354_v23 }
  0x54   :  { %7502 = vmatpush3.bf16.msra.mxu1 %v8709_v45  ;;  %6382 = vmatprep.subr.mxu0 %v8337_v17 }
  0x55   :  { %7503 = vmatprep.subr.bf16.mxu1 %v8269_v3 }
  0x56   :  { %6370 = vmatmul.mubr.f32.gmra.mrb[2].mxu0 %v8394_v37 }
  0x57   :  { %6372 = vmatprep.mubr.f32.mxu0 %v8447_v58  ;;  %6383 = vmatpush3.msra.mxu0 %v8337_v17 }
  0x58   :  { %7505 = vmatpush3.bf16.msra.mxu1 %v8720_v46  ;;  %7518 = vmatprep.subr.bf16.mxu0 %v8269_v3 }
  0x59   :  { %7506 = vmatprep.subr.bf16.mxu1 %v8269_v3 }
  0x5a   :  { %6373 = vmatmul.mubr.f32.gmra.mrb[4].mxu0 %v8472_v22 }
  0x5b   :  { %6489 = vmatmul.mubr.f32.vlgmr.msra.gmra.mrb[0].mxu1 %v8271_v63  ;;  %6375 = vmatprep.mubr.f32.mxu0 %v8490_v55 }
  0x5c   :  { %7508 = vmatpush3.bf16.msra.mxu1 %v8334_v16  ;;  %6507 = vmatprep.mubr.msk.f32.mxu1 %vm8270_vm1, %v8271_v63 }
  0x5d   :  { %7509 = vmatprep.subr.bf16.mxu1 %v8269_v3 }
  0x5e   :  { %6376 = vmatmul.mubr.f32.gmra.mrb[6].mxu0 %v8498_v56 }
  0x5f   :  { %6384 = vmatprep.mubr.f32.mxu0 %v8362_v25 }
  0x60   :  { %7511 = vmatpush3.bf16.msra.mxu1 %v8360_v24 }
  0x61   :  { %7512 = vmatprep.subr.bf16.mxu1 %v8269_v3 }
  0x62   :  { %6385 = vmatmul.mubr.f32.vlgmr.msra.gmra.mrb[0].mxu0 %v8364_v26 }
  0x63   :  { %6387 = vmatprep.mubr.f32.mxu0 %v8392_v36  ;;  %7520 = vmatpush3.bf16.msra.mxu0 %v8334_v16 }
  0x64   :  { %7514 = vmatpush3.bf16.msra.mxu1 %v8404_v39  ;;  %7521 = vmatprep.subr.bf16.mxu0 %v8269_v3 }
  0x65   :  { %7515 = vmatprep.subr.bf16.mxu1 %v8269_v3 }
  0x66   :  { %6388 = vmatmul.mubr.f32.gmra.mrb[2].mxu0 %v8394_v37 }
  0x67   :  { %6390 = vmatprep.mubr.f32.mxu0 %v8447_v58  ;;  %7523 = vmatpush3.bf16.msra.mxu0 %v8360_v24 }
  0x68   :  { %7517 = vmatpush3.bf16.msra.mxu1 %v8424_v47  ;;  %7524 = vmatprep.subr.bf16.mxu0 %v8269_v3 }
  0x69   :  { %7590 = vmatprep.subr.bf16.mxu1 %v8269_v3 }
  0x6a   :  { %6391 = vmatmul.mubr.f32.gmra.mrb[4].mxu0 %v8472_v22 }
  0x6b   :  { %6508 = vmatmul.mubr.f32.vlgmr.msra.gmra.mrb[0].mxu1 %v8271_v63  ;;  %6393 = vmatprep.mubr.f32.mxu0 %v8490_v55 }
  0x6c   :  { %7526 = vmatpush3.bf16.msra.mxu0 %v8404_v39  ;;  %7592 = vmatpush3.bf16.msra.mxu1 %v8334_v16 }
  0x6d   :  { %7527 = vmatprep.subr.bf16.mxu0 %v8269_v3  ;;  %7593 = vmatprep.subr.bf16.mxu1 %v8269_v3 }
  0x6e   :  { %6394 = vmatmul.mubr.f32.gmra.mrb[6].mxu0 %v8498_v56  ;;  %6640 = vmatprep.mubr.msk.f32.mxu1 %vm8270_vm1, %v8271_v63 }
  0x6f   :  { %6526 = vmatprep.mubr.msk.f32.mxu0 %vm8270_vm1, %v8271_v63 }
  0x70   :  { %7529 = vmatpush3.bf16.msra.mxu0 %v8424_v47  ;;  %7595 = vmatpush3.bf16.msra.mxu1 %v8360_v24 }
  0x71   :  { %7530 = vmatprep.subr.bf16.mxu0 %v8269_v3  ;;  %7596 = vmatprep.subr.bf16.mxu1 %v8269_v3 }
  0x74   :  { %7598 = vmatpush3.bf16.msra.mxu1 %v8404_v39 }
  0x75   :  { %7599 = vmatprep.subr.bf16.mxu1 %v8269_v3 }
  0x78   :  { %7601 = vmatpush3.bf16.msra.mxu1 %v8424_v47 }
  0x79   :  { %7602 = vmatprep.subr.bf16.mxu1 %v8269_v3 }
 0x135   :  { %v8773_v17 = vpop.f32.mrb[0].mxu0 }
 0x136   :  { %v792_v23 = vpop.f32.mrb[1].mxu0 }
 0x139   :  { %v8775_v25 = vpop.f32.mrb[2].mxu0 }
 0x13a   :  { %v8777_v26 = vpop.f32.mrb[3].mxu0 }
 0x13d   :  { %v8779_v36 = vpop.f32.mrb[4].mxu0 }
 0x13e   :  { %v1375_v37 = vpop.f32.mrb[0].mxu1  ;;  %v8781_v48 = vpop.f32.mrb[5].mxu0 }
 0x13f   :  { %v1379_v49 = vadd.f32 %v1375_v37, %v792_v23  ;;  %v6509_v53 = vpop.f32.mrb[1].mxu1 }
 0x141   :  { %8229 = vtanh.f32 %v1379_v49  ;;  %v8783_v54 = vpop.f32.mrb[6].mxu0 }
 0x142   :  { %v8785_v57 = vpop.f32.mrb[7].mxu0 }
 0x14b   :  { %v8230_v58 = vpop.eup %8229 }
 0x14c   :  { %v1382_v10 = vsel %vm838_vm2, %v8230_v58, 0 }
 0x14d   :  { %v1457_v22 = vand.u32 4294901760, %v1382_v10 }
 0x14f   :  { %v1458_v27 = vsub.f32 %v1382_v10, %v1457_v22 }
 0x151   :  { %v1459_v33 = vand.u32 4294901760, %v1458_v27 }
 0x153   :  { %v1460_v38 = vsub.f32 %v1458_v27, %v1459_v33 }
 0x155   :  { %v1461_v51 = vand.u32 4294901760, %v1460_v38 }
 0x157   :  { %6527 = vmatmul.mubr.f32.vlgmr.msra.gmra.mrb[8].mxu0 %v1461_v51 }
 0x158   :  { %7532 = vmatpush3.bf16.msra.mxu0 %v8547_v60  ;;  %6545 = vmatprep.mubr.msk.f32.mxu0 %vm8270_vm1, %v8271_v63 }
 0x159   :  { %7533 = vmatprep.subr.bf16.mxu0 %v8269_v3 }
 0x15c   :  { %7535 = vmatpush3.bf16.msra.mxu0 %v8580_v0 }
 0x15d   :  { %7536 = vmatprep.subr.bf16.mxu0 %v8269_v3 }
 0x160   :  { %7538 = vmatpush3.bf16.msra.mxu0 %v8599_v11 }
 0x161   :  { %7539 = vmatprep.subr.bf16.mxu0 %v8269_v3 }
 0x164   :  { %7541 = vmatpush3.bf16.msra.mxu0 %v8603_v12 }
 0x165   :  { %7542 = vmatprep.subr.bf16.mxu0 %v8269_v3 }
 0x167   :  { %6546 = vmatmul.mubr.f32.vlgmr.msra.gmra.mrb[8].mxu0 %v1457_v22 }
 0x168   :  { %7544 = vmatpush3.bf16.msra.mxu0 %v8611_v4  ;;  %6564 = vmatprep.mubr.msk.f32.mxu0 %vm8270_vm1, %v8271_v63 }
 0x169   :  { %7545 = vmatprep.subr.bf16.mxu0 %v8269_v3 }
 0x16c   :  { %7547 = vmatpush3.bf16.msra.mxu0 %v8621_v9 }
 0x16d   :  { %7548 = vmatprep.subr.bf16.mxu0 %v8269_v3 }
 0x170   :  { %7550 = vmatpush3.bf16.msra.mxu0 %v8631_v40 }
 0x171   :  { %7551 = vmatprep.subr.bf16.mxu0 %v8269_v3 }
 0x174   :  { %7553 = vmatpush3.bf16.msra.mxu0 %v8640_v13 }
 0x175   :  { %7554 = vmatprep.subr.bf16.mxu0 %v8269_v3 }
 0x177   :  { %6565 = vmatmul.mubr.f32.vlgmr.msra.gmra.mrb[8].mxu0 %v1458_v27 }
 0x178   :  { %7556 = vmatpush3.bf16.msra.mxu0 %v8334_v16  ;;  %6583 = vmatprep.mubr.msk.f32.mxu0 %vm8270_vm1, %v8271_v63 }
 0x179   :  { %7557 = vmatprep.subr.bf16.mxu0 %v8269_v3 }
 0x17c   :  { %7559 = vmatpush3.bf16.msra.mxu0 %v8360_v24 }
 0x17d   :  { %7560 = vmatprep.subr.bf16.mxu0 %v8269_v3 }
 0x180   :  { %7562 = vmatpush3.bf16.msra.mxu0 %v8404_v39 }
 0x181   :  { %7563 = vmatprep.subr.bf16.mxu0 %v8269_v3 }
 0x184   :  { %7565 = vmatpush3.bf16.msra.mxu0 %v8424_v47 }
 0x185   :  { %7566 = vmatprep.subr.bf16.mxu0 %v8269_v3 }
 0x187   :  { %6584 = vmatmul.mubr.f32.vlgmr.msra.gmra.mrb[8].mxu0 %v1459_v33 }
 0x188   :  { %7568 = vmatpush3.bf16.msra.mxu0 %v8682_v34  ;;  %6602 = vmatprep.mubr.msk.f32.mxu0 %vm8270_vm1, %v8271_v63 }
 0x189   :  { %7569 = vmatprep.subr.bf16.mxu0 %v8269_v3 }
 0x18c   :  { %7571 = vmatpush3.bf16.msra.mxu0 %v8696_v43 }
 0x18d   :  { %7572 = vmatprep.subr.bf16.mxu0 %v8269_v3 }
 0x190   :  { %7574 = vmatpush3.bf16.msra.mxu0 %v8709_v45 }
 0x191   :  { %7575 = vmatprep.subr.bf16.mxu0 %v8269_v3 }
 0x194   :  { %7577 = vmatpush3.bf16.msra.mxu0 %v8720_v46 }
 0x195   :  { %7578 = vmatprep.subr.bf16.mxu0 %v8269_v3 }
 0x197   :  { %6603 = vmatmul.mubr.f32.vlgmr.msra.gmra.mrb[8].mxu0 %v1457_v22 }
 0x198   :  { %7580 = vmatpush3.bf16.msra.mxu0 %v8334_v16  ;;  %6621 = vmatprep.mubr.msk.f32.mxu0 %vm8270_vm1, %v8271_v63 }
 0x199   :  { %7581 = vmatprep.subr.bf16.mxu0 %v8269_v3 }
 0x19c   :  { %7583 = vmatpush3.bf16.msra.mxu0 %v8360_v24 }
 0x19d   :  { %7584 = vmatprep.subr.bf16.mxu0 %v8269_v3 }
 0x1a0   :  { %7586 = vmatpush3.bf16.msra.mxu0 %v8404_v39 }
 0x1a1   :  { %7587 = vmatprep.subr.bf16.mxu0 %v8269_v3 }
 0x1a4   :  { %7589 = vmatpush3.bf16.msra.mxu0 %v8424_v47 }
 0x1a5   :  { %7662 = vmatprep.subr.bf16.mxu0 %v8269_v3 }
 0x1a7   :  { %6622 = vmatmul.mubr.f32.vlgmr.msra.gmra.mrb[8].mxu0 %v1457_v22 }
 0x1a8   :  { %7664 = vmatpush3.bf16.msra.mxu0 %v8334_v16  ;;  %6754 = vmatprep.mubr.msk.f32.mxu0 %vm8270_vm1, %v8271_v63 }
 0x1a9   :  { %7665 = vmatprep.subr.bf16.mxu0 %v8269_v3 }
 0x1ac   :  { %7667 = vmatpush3.bf16.msra.mxu0 %v8360_v24 }
 0x1ad   :  { %7668 = vmatprep.subr.bf16.mxu0 %v8269_v3 }
 0x1b0   :  { %7670 = vmatpush3.bf16.msra.mxu0 %v8404_v39 }
 0x1b1   :  { %7671 = vmatprep.subr.bf16.mxu0 %v8269_v3 }
 0x1b4   :  { %7673 = vmatpush3.bf16.msra.mxu0 %v8424_v47 }
 0x1b5   :  { %7674 = vmatprep.subr.bf16.mxu0 %v8269_v3 }
 0x27a   :  { %v1917_v52 = vpop.f32.mrb[8].mxu0 }
 0x27b   :  { %v1921_v55 = vadd.f32 %v8773_v17, %v1917_v52  ;;  %v6623_v5 = vpop.f32.mrb[9].mxu0 }
 0x27d   :  { %8231 = vtanh.f32 %v1921_v55 }
 0x287   :  { %v8232_v56 = vpop.eup %8231 }
 0x288   :  { %v1924_v59 = vsel %vm838_vm2, %v8232_v56, 0 }
 0x289   :  { %v1999_v61 = vand.u32 4294901760, %v1924_v59 }
 0x28b   :  { %v2000_v62 = vsub.f32 %v1924_v59, %v1999_v61 }
 0x28d   :  { %v2001_v7 = vand.u32 4294901760, %v2000_v62 }
 0x28f   :  { %v2002_v14 = vsub.f32 %v2000_v62, %v2001_v7 }
 0x291   :  { %v2003_v15 = vand.u32 4294901760, %v2002_v14 }
 0x293   :  { %6641 = vmatmul.mubr.f32.vlgmr.msra.gmra.mrb[2].mxu1 %v2003_v15 }
 0x294   :  { %7604 = vmatpush3.bf16.msra.mxu1 %v8547_v60  ;;  %6659 = vmatprep.mubr.msk.f32.mxu1 %vm8270_vm1, %v8271_v63 }
 0x295   :  { %7605 = vmatprep.subr.bf16.mxu1 %v8269_v3 }
 0x298   :  { %7607 = vmatpush3.bf16.msra.mxu1 %v8580_v0 }
 0x299   :  { %7608 = vmatprep.subr.bf16.mxu1 %v8269_v3 }
 0x29c   :  { %7610 = vmatpush3.bf16.msra.mxu1 %v8599_v11 }
 0x29d   :  { %7611 = vmatprep.subr.bf16.mxu1 %v8269_v3 }
 0x2a0   :  { %7613 = vmatpush3.bf16.msra.mxu1 %v8603_v12 }
 0x2a1   :  { %7614 = vmatprep.subr.bf16.mxu1 %v8269_v3 }
 0x2a3   :  { %6660 = vmatmul.mubr.f32.vlgmr.msra.gmra.mrb[2].mxu1 %v1999_v61 }
 0x2a4   :  { %7616 = vmatpush3.bf16.msra.mxu1 %v8611_v4  ;;  %6678 = vmatprep.mubr.msk.f32.mxu1 %vm8270_vm1, %v8271_v63 }
 0x2a5   :  { %7617 = vmatprep.subr.bf16.mxu1 %v8269_v3 }
 0x2a8   :  { %7619 = vmatpush3.bf16.msra.mxu1 %v8621_v9 }
 0x2a9   :  { %7620 = vmatprep.subr.bf16.mxu1 %v8269_v3 }
 0x2ac   :  { %7622 = vmatpush3.bf16.msra.mxu1 %v8631_v40 }
 0x2ad   :  { %7623 = vmatprep.subr.bf16.mxu1 %v8269_v3 }
 0x2b0   :  { %7625 = vmatpush3.bf16.msra.mxu1 %v8640_v13 }
 0x2b1   :  { %7626 = vmatprep.subr.bf16.mxu1 %v8269_v3 }
 0x2b3   :  { %6679 = vmatmul.mubr.f32.vlgmr.msra.gmra.mrb[2].mxu1 %v2000_v62 }
 0x2b4   :  { %7628 = vmatpush3.bf16.msra.mxu1 %v8334_v16  ;;  %6697 = vmatprep.mubr.msk.f32.mxu1 %vm8270_vm1, %v8271_v63 }
 0x2b5   :  { %7629 = vmatprep.subr.bf16.mxu1 %v8269_v3 }
 0x2b8   :  { %7631 = vmatpush3.bf16.msra.mxu1 %v8360_v24 }
 0x2b9   :  { %7632 = vmatprep.subr.bf16.mxu1 %v8269_v3 }
 0x2bc   :  { %7634 = vmatpush3.bf16.msra.mxu1 %v8404_v39 }
 0x2bd   :  { %7635 = vmatprep.subr.bf16.mxu1 %v8269_v3 }
 0x2c0   :  { %7637 = vmatpush3.bf16.msra.mxu1 %v8424_v47 }
 0x2c1   :  { %7638 = vmatprep.subr.bf16.mxu1 %v8269_v3 }
 0x2c3   :  { %6698 = vmatmul.mubr.f32.vlgmr.msra.gmra.mrb[2].mxu1 %v2001_v7 }
 0x2c4   :  { %7640 = vmatpush3.bf16.msra.mxu1 %v8682_v34  ;;  %6716 = vmatprep.mubr.msk.f32.mxu1 %vm8270_vm1, %v8271_v63 }
 0x2c5   :  { %7641 = vmatprep.subr.bf16.mxu1 %v8269_v3 }
 0x2c8   :  { %7643 = vmatpush3.bf16.msra.mxu1 %v8696_v43 }
 0x2c9   :  { %7644 = vmatprep.subr.bf16.mxu1 %v8269_v3 }
 0x2cc   :  { %7646 = vmatpush3.bf16.msra.mxu1 %v8709_v45 }
 0x2cd   :  { %7647 = vmatprep.subr.bf16.mxu1 %v8269_v3 }
 0x2d0   :  { %7649 = vmatpush3.bf16.msra.mxu1 %v8720_v46 }
 0x2d1   :  { %7650 = vmatprep.subr.bf16.mxu1 %v8269_v3 }
 0x2d3   :  { %6717 = vmatmul.mubr.f32.vlgmr.msra.gmra.mrb[2].mxu1 %v1999_v61 }
 0x2d4   :  { %7652 = vmatpush3.bf16.msra.mxu1 %v8334_v16  ;;  %6735 = vmatprep.mubr.msk.f32.mxu1 %vm8270_vm1, %v8271_v63 }
 0x2d5   :  { %7653 = vmatprep.subr.bf16.mxu1 %v8269_v3 }
 0x2d8   :  { %7655 = vmatpush3.bf16.msra.mxu1 %v8360_v24 }
 0x2d9   :  { %7656 = vmatprep.subr.bf16.mxu1 %v8269_v3 }
 0x2dc   :  { %7658 = vmatpush3.bf16.msra.mxu1 %v8404_v39 }
 0x2dd   :  { %7659 = vmatprep.subr.bf16.mxu1 %v8269_v3 }
 0x2e0   :  { %7661 = vmatpush3.bf16.msra.mxu1 %v8424_v47 }
 0x2e1   :  { %7734 = vmatprep.subr.bf16.mxu1 %v8269_v3 }
 0x2e3   :  { %6736 = vmatmul.mubr.f32.vlgmr.msra.gmra.mrb[2].mxu1 %v1999_v61 }
 0x2e4   :  { %7736 = vmatpush3.bf16.msra.mxu1 %v8334_v16  ;;  %6868 = vmatprep.mubr.msk.f32.mxu1 %vm8270_vm1, %v8271_v63 }
 0x2e5   :  { %7737 = vmatprep.subr.bf16.mxu1 %v8269_v3 }
 0x2e8   :  { %7739 = vmatpush3.bf16.msra.mxu1 %v8360_v24 }
 0x2e9   :  { %7740 = vmatprep.subr.bf16.mxu1 %v8269_v3 }
 0x2ec   :  { %7742 = vmatpush3.bf16.msra.mxu1 %v8404_v39 }
 0x2ed   :  { %7743 = vmatprep.subr.bf16.mxu1 %v8269_v3 }
 0x2f0   :  { %7745 = vmatpush3.bf16.msra.mxu1 %v8424_v47 }
 0x2f1   :  { %7746 = vmatprep.subr.bf16.mxu1 %v8269_v3 }
 0x3b6   :  { %v2459_v32 = vpop.f32.mrb[2].mxu1 }
 0x3b7   :  { %v2463_v50 = vadd.f32 %v2459_v32, %v8777_v26  ;;  %v6737_v1 = vpop.f32.mrb[3].mxu1 }
 0x3b9   :  { %8233 = vtanh.f32 %v2463_v50 }
 0x3c3   :  { %v8234_v6 = vpop.eup %8233 }
 0x3c4   :  { %v2466_v20 = vsel %vm838_vm2, %v8234_v6, 0 }
 0x3c5   :  { %v2541_v21 = vand.u32 4294901760, %v2466_v20 }
 0x3c7   :  { %v2542_v31 = vsub.f32 %v2466_v20, %v2541_v21 }
 0x3c9   :  { %v2543_v28 = vand.u32 4294901760, %v2542_v31 }
 0x3cb   :  { %v2544_v8 = vsub.f32 %v2542_v31, %v2543_v28 }
 0x3cd   :  { %v2545_v29 = vand.u32 4294901760, %v2544_v8  ;;  %v30_v8 = vld [vmem:[%s9336_s1 + $0x90] sm:$0xff] }
 0x3cf   :  { %6755 = vmatmul.mubr.f32.vlgmr.msra.gmra.mrb[10].mxu0 %v2545_v29 }
 0x3d0   :  { %7676 = vmatpush3.bf16.msra.mxu0 %v8547_v60  ;;  %6773 = vmatprep.mubr.msk.f32.mxu0 %vm8270_vm1, %v8271_v63 }
 0x3d1   :  { %7677 = vmatprep.subr.bf16.mxu0 %v8269_v3 }
 0x3d4   :  { %7679 = vmatpush3.bf16.msra.mxu0 %v8580_v0 }
 0x3d5   :  { %7680 = vmatprep.subr.bf16.mxu0 %v8269_v3 }
 0x3d8   :  { %7682 = vmatpush3.bf16.msra.mxu0 %v8599_v11 }
 0x3d9   :  { %7683 = vmatprep.subr.bf16.mxu0 %v8269_v3 }
 0x3dc   :  { %7685 = vmatpush3.bf16.msra.mxu0 %v8603_v12 }
 0x3dd   :  { %7686 = vmatprep.subr.bf16.mxu0 %v8269_v3 }
 0x3df   :  { %6774 = vmatmul.mubr.f32.vlgmr.msra.gmra.mrb[10].mxu0 %v2541_v21 }
 0x3e0   :  { %7688 = vmatpush3.bf16.msra.mxu0 %v8611_v4  ;;  %6792 = vmatprep.mubr.msk.f32.mxu0 %vm8270_vm1, %v8271_v63 }
 0x3e1   :  { %7689 = vmatprep.subr.bf16.mxu0 %v8269_v3 }
 0x3e4   :  { %7691 = vmatpush3.bf16.msra.mxu0 %v8621_v9 }
 0x3e5   :  { %7692 = vmatprep.subr.bf16.mxu0 %v8269_v3 }
 0x3e8   :  { %7694 = vmatpush3.bf16.msra.mxu0 %v8631_v40 }
 0x3e9   :  { %7695 = vmatprep.subr.bf16.mxu0 %v8269_v3 }
 0x3ec   :  { %7697 = vmatpush3.bf16.msra.mxu0 %v8640_v13 }
 0x3ed   :  { %7698 = vmatprep.subr.bf16.mxu0 %v8269_v3 }
 0x3ef   :  { %6793 = vmatmul.mubr.f32.vlgmr.msra.gmra.mrb[10].mxu0 %v2542_v31 }
 0x3f0   :  { %7700 = vmatpush3.bf16.msra.mxu0 %v8334_v16  ;;  %6811 = vmatprep.mubr.msk.f32.mxu0 %vm8270_vm1, %v8271_v63 }
 0x3f1   :  { %7701 = vmatprep.subr.bf16.mxu0 %v8269_v3 }
 0x3f4   :  { %7703 = vmatpush3.bf16.msra.mxu0 %v8360_v24 }
 0x3f5   :  { %7704 = vmatprep.subr.bf16.mxu0 %v8269_v3 }
 0x3f8   :  { %7706 = vmatpush3.bf16.msra.mxu0 %v8404_v39 }
 0x3f9   :  { %7707 = vmatprep.subr.bf16.mxu0 %v8269_v3 }
 0x3fc   :  { %7709 = vmatpush3.bf16.msra.mxu0 %v8424_v47 }
 0x3fd   :  { %7710 = vmatprep.subr.bf16.mxu0 %v8269_v3 }
 0x3ff   :  { %6812 = vmatmul.mubr.f32.vlgmr.msra.gmra.mrb[10].mxu0 %v2543_v28  ;;  %v29_v28 = vld [vmem:[%s9336_s1 + $0x88] sm:$0xff] }
 0x400   :  { %7712 = vmatpush3.bf16.msra.mxu0 %v8682_v34  ;;  %6830 = vmatprep.mubr.msk.f32.mxu0 %vm8270_vm1, %v8271_v63 }
 0x401   :  { %7713 = vmatprep.subr.bf16.mxu0 %v8269_v3 }
 0x404   :  { %7715 = vmatpush3.bf16.msra.mxu0 %v8696_v43 }
 0x405   :  { %7716 = vmatprep.subr.bf16.mxu0 %v8269_v3 }
 0x408   :  { %7718 = vmatpush3.bf16.msra.mxu0 %v8709_v45 }
 0x409   :  { %7719 = vmatprep.subr.bf16.mxu0 %v8269_v3 }
 0x40c   :  { %7721 = vmatpush3.bf16.msra.mxu0 %v8720_v46 }
 0x40d   :  { %7722 = vmatprep.subr.bf16.mxu0 %v8269_v3 }
 0x40f   :  { %6831 = vmatmul.mubr.f32.vlgmr.msra.gmra.mrb[10].mxu0 %v2541_v21 }
 0x410   :  { %7724 = vmatpush3.bf16.msra.mxu0 %v8334_v16  ;;  %6849 = vmatprep.mubr.msk.f32.mxu0 %vm8270_vm1, %v8271_v63 }
 0x411   :  { %7725 = vmatprep.subr.bf16.mxu0 %v8269_v3 }
 0x414   :  { %7727 = vmatpush3.bf16.msra.mxu0 %v8360_v24 }
 0x415   :  { %7728 = vmatprep.subr.bf16.mxu0 %v8269_v3 }
 0x418   :  { %7730 = vmatpush3.bf16.msra.mxu0 %v8404_v39 }
 0x419   :  { %7731 = vmatprep.subr.bf16.mxu0 %v8269_v3 }
 0x41c   :  { %7733 = vmatpush3.bf16.msra.mxu0 %v8424_v47 }
 0x41d   :  { %7806 = vmatprep.subr.bf16.mxu0 %v8269_v3 }
 0x41f   :  { %6850 = vmatmul.mubr.f32.vlgmr.msra.gmra.mrb[10].mxu0 %v2541_v21 }
 0x420   :  { %7808 = vmatpush3.bf16.msra.mxu0 %v8334_v16  ;;  %6982 = vmatprep.mubr.msk.f32.mxu0 %vm8270_vm1, %v8271_v63 }
 0x421   :  { %7809 = vmatprep.subr.bf16.mxu0 %v8269_v3 }
 0x424   :  { %7811 = vmatpush3.bf16.msra.mxu0 %v8360_v24 }
 0x425   :  { %7812 = vmatprep.subr.bf16.mxu0 %v8269_v3 }
 0x428   :  { %7814 = vmatpush3.bf16.msra.mxu0 %v8404_v39 }
 0x429   :  { %7815 = vmatprep.subr.bf16.mxu0 %v8269_v3 }
 0x42c   :  { %7817 = vmatpush3.bf16.msra.mxu0 %v8424_v47 }
 0x42d   :  { %7818 = vmatprep.subr.bf16.mxu0 %v8269_v3 }
 0x4f2   :  { %v3001_v41 = vpop.f32.mrb[10].mxu0 }
 0x4f3   :  { %v3005_v18 = vadd.f32 %v8775_v25, %v3001_v41  ;;  %v6851_v30 = vpop.f32.mrb[11].mxu0 }
 0x4f4   :  { %v5201_v30 = vand.u32 4294901760, %v29_v28 }
 0x4f5   :  { %8235 = vtanh.f32 %v3005_v18 }
 0x4ff   :  { %v8236_v19 = vpop.eup %8235 }
 0x500   :  { %v3008_v2 = vsel %vm838_vm2, %v8236_v19, 0  ;;  %v5204_v19 = vand.u32 4294901760, %v30_v8 }
 0x501   :  { %v3083_v35 = vand.u32 4294901760, %v3008_v2 }
 0x503   :  { %v3084_v42 = vsub.f32 %v3008_v2, %v3083_v35 }
 0x505   :  { %v3085_v44 = vand.u32 4294901760, %v3084_v42 }
 0x507   :  { %v3086_v17 = vsub.f32 %v3084_v42, %v3085_v44 }
 0x509   :  { %v3087_v23 = vand.u32 4294901760, %v3086_v17  ;;  %v9255_v17 = vsub.f32 %v30_v8, %v5204_v19 }
 0x50b   :  { %6869 = vmatmul.mubr.f32.vlgmr.msra.gmra.mrb[4].mxu1 %v3087_v23 }
 0x50c   :  { %7748 = vmatpush3.bf16.msra.mxu1 %v8547_v60  ;;  %6887 = vmatprep.mubr.msk.f32.mxu1 %vm8270_vm1, %v8271_v63 }
 0x50d   :  { %7749 = vmatprep.subr.bf16.mxu1 %v8269_v3 }
 0x510   :  { %7751 = vmatpush3.bf16.msra.mxu1 %v8580_v0 }
 0x511   :  { %7752 = vmatprep.subr.bf16.mxu1 %v8269_v3 }
 0x514   :  { %7754 = vmatpush3.bf16.msra.mxu1 %v8599_v11 }
 0x515   :  { %7755 = vmatprep.subr.bf16.mxu1 %v8269_v3 }
 0x518   :  { %7757 = vmatpush3.bf16.msra.mxu1 %v8603_v12 }
 0x519   :  { %7758 = vmatprep.subr.bf16.mxu1 %v8269_v3 }
 0x51b   :  { %6888 = vmatmul.mubr.f32.vlgmr.msra.gmra.mrb[4].mxu1 %v3083_v35 }
 0x51c   :  { %7760 = vmatpush3.bf16.msra.mxu1 %v8611_v4  ;;  %6906 = vmatprep.mubr.msk.f32.mxu1 %vm8270_vm1, %v8271_v63 }
 0x51d   :  { %7761 = vmatprep.subr.bf16.mxu1 %v8269_v3 }
 0x520   :  { %7763 = vmatpush3.bf16.msra.mxu1 %v8621_v9 }
 0x521   :  { %7764 = vmatprep.subr.bf16.mxu1 %v8269_v3 }
 0x524   :  { %7766 = vmatpush3.bf16.msra.mxu1 %v8631_v40 }
 0x525   :  { %7767 = vmatprep.subr.bf16.mxu1 %v8269_v3 }
 0x528   :  { %7769 = vmatpush3.bf16.msra.mxu1 %v8640_v13 }
 0x529   :  { %7770 = vmatprep.subr.bf16.mxu1 %v8269_v3 }
 0x52b   :  { %6907 = vmatmul.mubr.f32.vlgmr.msra.gmra.mrb[4].mxu1 %v3084_v42  ;;  %v9250_v42 = vsub.f32 %v29_v28, %v5201_v30 }
 0x52c   :  { %7772 = vmatpush3.bf16.msra.mxu1 %v8334_v16  ;;  %6925 = vmatprep.mubr.msk.f32.mxu1 %vm8270_vm1, %v8271_v63 }
 0x52d   :  { %7773 = vmatprep.subr.bf16.mxu1 %v8269_v3 }
 0x530   :  { %7775 = vmatpush3.bf16.msra.mxu1 %v8360_v24 }
 0x531   :  { %7776 = vmatprep.subr.bf16.mxu1 %v8269_v3 }
 0x534   :  { %7778 = vmatpush3.bf16.msra.mxu1 %v8404_v39 }
 0x535   :  { %7779 = vmatprep.subr.bf16.mxu1 %v8269_v3 }
 0x538   :  { %7781 = vmatpush3.bf16.msra.mxu1 %v8424_v47 }
 0x539   :  { %7782 = vmatprep.subr.bf16.mxu1 %v8269_v3 }
 0x53b   :  { %6926 = vmatmul.mubr.f32.vlgmr.msra.gmra.mrb[4].mxu1 %v3085_v44  ;;  %v9253_v44 = vpack.c.bf16 %v5204_v19, %v5201_v30 }
 0x53c   :  { %7784 = vmatpush3.bf16.msra.mxu1 %v8682_v34  ;;  %6944 = vmatprep.mubr.msk.f32.mxu1 %vm8270_vm1, %v8271_v63 }
 0x53d   :  { %7785 = vmatprep.subr.bf16.mxu1 %v8269_v3 }
 0x540   :  { %7787 = vmatpush3.bf16.msra.mxu1 %v8696_v43 }
 0x541   :  { %7788 = vmatprep.subr.bf16.mxu1 %v8269_v3 }
 0x544   :  { %7790 = vmatpush3.bf16.msra.mxu1 %v8709_v45 }
 0x545   :  { %7791 = vmatprep.subr.bf16.mxu1 %v8269_v3 }
 0x548   :  { %7793 = vmatpush3.bf16.msra.mxu1 %v8720_v46 }
 0x549   :  { %7794 = vmatprep.subr.bf16.mxu1 %v8269_v3 }
 0x54b   :  { %6945 = vmatmul.mubr.f32.vlgmr.msra.gmra.mrb[4].mxu1 %v3083_v35 }
 0x54c   :  { %7796 = vmatpush3.bf16.msra.mxu1 %v8334_v16  ;;  %6963 = vmatprep.mubr.msk.f32.mxu1 %vm8270_vm1, %v8271_v63 }
 0x54d   :  { %7797 = vmatprep.subr.bf16.mxu1 %v8269_v3 }
 0x550   :  { %7799 = vmatpush3.bf16.msra.mxu1 %v8360_v24 }
 0x551   :  { %7800 = vmatprep.subr.bf16.mxu1 %v8269_v3 }
 0x554   :  { %7802 = vmatpush3.bf16.msra.mxu1 %v8404_v39 }
 0x555   :  { %7803 = vmatprep.subr.bf16.mxu1 %v8269_v3 }
 0x558   :  { %7805 = vmatpush3.bf16.msra.mxu1 %v8424_v47 }
 0x559   :  { %7878 = vmatprep.subr.bf16.mxu1 %v8269_v3 }
 0x55b   :  { %6964 = vmatmul.mubr.f32.vlgmr.msra.gmra.mrb[4].mxu1 %v3083_v35 }
 0x55c   :  { %7880 = vmatpush3.bf16.msra.mxu1 %v8334_v16  ;;  %7096 = vmatprep.mubr.msk.f32.mxu1 %vm8270_vm1, %v8271_v63 }
 0x55d   :  { %7881 = vmatprep.subr.bf16.mxu1 %v8269_v3 }
 0x560   :  { %7883 = vmatpush3.bf16.msra.mxu1 %v8360_v24 }
 0x561   :  { %7884 = vmatprep.subr.bf16.mxu1 %v8269_v3 }
 0x564   :  { %7886 = vmatpush3.bf16.msra.mxu1 %v8404_v39 }
 0x565   :  { %7887 = vmatprep.subr.bf16.mxu1 %v8269_v3 }
 0x568   :  { %7889 = vmatpush3.bf16.msra.mxu1 %v8424_v47 }
 0x569   :  { %7890 = vmatprep.subr.bf16.mxu1 %v8269_v3 }
 0x62e   :  { %v3543_v25 = vpop.f32.mrb[4].mxu1 }
 0x62f   :  { %v3547_v26 = vadd.f32 %v3543_v25, %v8781_v48  ;;  %v6965_v37 = vpop.f32.mrb[5].mxu1 }
 0x631   :  { %8237 = vtanh.f32 %v3547_v26 }
 0x63b   :  { %v8238_v49 = vpop.eup %8237 }
 0x63c   :  { %v3550_v53 = vsel %vm838_vm2, %v8238_v49, 0 }
 0x63d   :  { %v3625_v58 = vand.u32 4294901760, %v3550_v53 }
 0x63f   :  { %v3626_v10 = vsub.f32 %v3550_v53, %v3625_v58 }
 0x641   :  { %v3627_v22 = vand.u32 4294901760, %v3626_v10 }
 0x643   :  { %v3628_v27 = vsub.f32 %v3626_v10, %v3627_v22 }
 0x645   :  { %v3629_v33 = vand.u32 4294901760, %v3628_v27 }
 0x647   :  { %6983 = vmatmul.mubr.f32.vlgmr.msra.gmra.mrb[12].mxu0 %v3629_v33 }
 0x648   :  { %7820 = vmatpush3.bf16.msra.mxu0 %v8547_v60  ;;  %7001 = vmatprep.mubr.msk.f32.mxu0 %vm8270_vm1, %v8271_v63 }
 0x649   :  { %7821 = vmatprep.subr.bf16.mxu0 %v8269_v3 }
 0x64c   :  { %7823 = vmatpush3.bf16.msra.mxu0 %v8580_v0 }
 0x64d   :  { %7824 = vmatprep.subr.bf16.mxu0 %v8269_v3 }
 0x650   :  { %7826 = vmatpush3.bf16.msra.mxu0 %v8599_v11 }
 0x651   :  { %7827 = vmatprep.subr.bf16.mxu0 %v8269_v3 }
 0x654   :  { %7829 = vmatpush3.bf16.msra.mxu0 %v8603_v12 }
 0x655   :  { %7830 = vmatprep.subr.bf16.mxu0 %v8269_v3 }
 0x657   :  { %7002 = vmatmul.mubr.f32.vlgmr.msra.gmra.mrb[12].mxu0 %v3625_v58 }
 0x658   :  { %7832 = vmatpush3.bf16.msra.mxu0 %v8611_v4  ;;  %7020 = vmatprep.mubr.msk.f32.mxu0 %vm8270_vm1, %v8271_v63 }
 0x659   :  { %7833 = vmatprep.subr.bf16.mxu0 %v8269_v3 }
 0x65c   :  { %7835 = vmatpush3.bf16.msra.mxu0 %v8621_v9 }
 0x65d   :  { %7836 = vmatprep.subr.bf16.mxu0 %v8269_v3 }
 0x660   :  { %7838 = vmatpush3.bf16.msra.mxu0 %v8631_v40 }
 0x661   :  { %7839 = vmatprep.subr.bf16.mxu0 %v8269_v3 }
 0x664   :  { %7841 = vmatpush3.bf16.msra.mxu0 %v8640_v13 }
 0x665   :  { %7842 = vmatprep.subr.bf16.mxu0 %v8269_v3 }
 0x667   :  { %7021 = vmatmul.mubr.f32.vlgmr.msra.gmra.mrb[12].mxu0 %v3626_v10 }
 0x668   :  { %7844 = vmatpush3.bf16.msra.mxu0 %v8334_v16  ;;  %7039 = vmatprep.mubr.msk.f32.mxu0 %vm8270_vm1, %v8271_v63 }
 0x669   :  { %7845 = vmatprep.subr.bf16.mxu0 %v8269_v3 }
 0x66c   :  { %7847 = vmatpush3.bf16.msra.mxu0 %v8360_v24 }
 0x66d   :  { %7848 = vmatprep.subr.bf16.mxu0 %v8269_v3 }
 0x670   :  { %7850 = vmatpush3.bf16.msra.mxu0 %v8404_v39 }
 0x671   :  { %7851 = vmatprep.subr.bf16.mxu0 %v8269_v3 }
 0x674   :  { %7853 = vmatpush3.bf16.msra.mxu0 %v8424_v47 }
 0x675   :  { %7854 = vmatprep.subr.bf16.mxu0 %v8269_v3 }
 0x677   :  { %7040 = vmatmul.mubr.f32.vlgmr.msra.gmra.mrb[12].mxu0 %v3627_v22 }
 0x678   :  { %7856 = vmatpush3.bf16.msra.mxu0 %v8682_v34  ;;  %7058 = vmatprep.mubr.msk.f32.mxu0 %vm8270_vm1, %v8271_v63 }
 0x679   :  { %7857 = vmatprep.subr.bf16.mxu0 %v8269_v3 }
 0x67c   :  { %7859 = vmatpush3.bf16.msra.mxu0 %v8696_v43 }
 0x67d   :  { %7860 = vmatprep.subr.bf16.mxu0 %v8269_v3 }
 0x680   :  { %7862 = vmatpush3.bf16.msra.mxu0 %v8709_v45 }
 0x681   :  { %7863 = vmatprep.subr.bf16.mxu0 %v8269_v3 }
 0x684   :  { %7865 = vmatpush3.bf16.msra.mxu0 %v8720_v46 }
 0x685   :  { %7866 = vmatprep.subr.bf16.mxu0 %v8269_v3 }
 0x687   :  { %7059 = vmatmul.mubr.f32.vlgmr.msra.gmra.mrb[12].mxu0 %v3625_v58 }
 0x688   :  { %7868 = vmatpush3.bf16.msra.mxu0 %v8334_v16  ;;  %7077 = vmatprep.mubr.msk.f32.mxu0 %vm8270_vm1, %v8271_v63 }
 0x689   :  { %7869 = vmatprep.subr.bf16.mxu0 %v8269_v3 }
 0x68c   :  { %7871 = vmatpush3.bf16.msra.mxu0 %v8360_v24 }
 0x68d   :  { %7872 = vmatprep.subr.bf16.mxu0 %v8269_v3 }
 0x690   :  { %7874 = vmatpush3.bf16.msra.mxu0 %v8404_v39 }
 0x691   :  { %7875 = vmatprep.subr.bf16.mxu0 %v8269_v3 }
 0x694   :  { %7877 = vmatpush3.bf16.msra.mxu0 %v8424_v47 }
 0x695   :  { %7950 = vmatprep.subr.bf16.mxu0 %v8269_v3 }
 0x697   :  { %7078 = vmatmul.mubr.f32.vlgmr.msra.gmra.mrb[12].mxu0 %v3625_v58 }
 0x698   :  { %7952 = vmatpush3.bf16.msra.mxu0 %v8334_v16  ;;  %7210 = vmatprep.mubr.msk.f32.mxu0 %vm8270_vm1, %v8271_v63 }
 0x699   :  { %7953 = vmatprep.subr.bf16.mxu0 %v8269_v3 }
 0x69c   :  { %7955 = vmatpush3.bf16.msra.mxu0 %v8360_v24 }
 0x69d   :  { %7956 = vmatprep.subr.bf16.mxu0 %v8269_v3 }
 0x6a0   :  { %7958 = vmatpush3.bf16.msra.mxu0 %v8404_v39 }
 0x6a1   :  { %7959 = vmatprep.subr.bf16.mxu0 %v8269_v3 }
 0x6a4   :  { %7961 = vmatpush3.bf16.msra.mxu0 %v8424_v47 }
 0x6a5   :  { %7962 = vmatprep.subr.bf16.mxu0 %v8269_v3 }
 0x76a   :  { %v4085_v48 = vpop.f32.mrb[12].mxu0 }
 0x76b   :  { %v4089_v38 = vadd.f32 %v8779_v36, %v4085_v48  ;;  %v7079_v51 = vpop.f32.mrb[13].mxu0 }
 0x76d   :  { %8239 = vtanh.f32 %v4089_v38 }
 0x777   :  { %v8240_v52 = vpop.eup %8239 }
 0x778   :  { %v4092_v55 = vsel %vm838_vm2, %v8240_v52, 0 }
 0x779   :  { %v4167_v5 = vand.u32 4294901760, %v4092_v55 }
 0x77b   :  { %v4168_v56 = vsub.f32 %v4092_v55, %v4167_v5 }
 0x77d   :  { %v4169_v59 = vand.u32 4294901760, %v4168_v56 }
 0x77f   :  { %v4170_v61 = vsub.f32 %v4168_v56, %v4169_v59 }
 0x781   :  { %v4171_v62 = vand.u32 4294901760, %v4170_v61  ;;  %v5317_v61 = vand.u32 4294901760, %v9255_v17 }
 0x783   :  { %7097 = vmatmul.mubr.f32.vlgmr.msra.gmra.mrb[6].mxu1 %v4171_v62 }
 0x784   :  { %7892 = vmatpush3.bf16.msra.mxu1 %v8547_v60  ;;  %7115 = vmatprep.mubr.msk.f32.mxu1 %vm8270_vm1, %v8271_v63 }
 0x785   :  { %7893 = vmatprep.subr.bf16.mxu1 %v8269_v3 }
 0x788   :  { %7895 = vmatpush3.bf16.msra.mxu1 %v8580_v0 }
 0x789   :  { %7896 = vmatprep.subr.bf16.mxu1 %v8269_v3 }
 0x78c   :  { %7898 = vmatpush3.bf16.msra.mxu1 %v8599_v11 }
 0x78d   :  { %7899 = vmatprep.subr.bf16.mxu1 %v8269_v3 }
 0x790   :  { %7901 = vmatpush3.bf16.msra.mxu1 %v8603_v12 }
 0x791   :  { %7902 = vmatprep.subr.bf16.mxu1 %v8269_v3 }
 0x793   :  { %7116 = vmatmul.mubr.f32.vlgmr.msra.gmra.mrb[6].mxu1 %v4167_v5 }
 0x794   :  { %7904 = vmatpush3.bf16.msra.mxu1 %v8611_v4  ;;  %7134 = vmatprep.mubr.msk.f32.mxu1 %vm8270_vm1, %v8271_v63 }
 0x795   :  { %7905 = vmatprep.subr.bf16.mxu1 %v8269_v3 }
 0x798   :  { %7907 = vmatpush3.bf16.msra.mxu1 %v8621_v9 }
 0x799   :  { %7908 = vmatprep.subr.bf16.mxu1 %v8269_v3 }
 0x79c   :  { %7910 = vmatpush3.bf16.msra.mxu1 %v8631_v40 }
 0x79d   :  { %7911 = vmatprep.subr.bf16.mxu1 %v8269_v3 }
 0x7a0   :  { %7913 = vmatpush3.bf16.msra.mxu1 %v8640_v13 }
 0x7a1   :  { %7914 = vmatprep.subr.bf16.mxu1 %v8269_v3 }
 0x7a3   :  { %7135 = vmatmul.mubr.f32.vlgmr.msra.gmra.mrb[6].mxu1 %v4168_v56 }
 0x7a4   :  { %7916 = vmatpush3.bf16.msra.mxu1 %v8334_v16  ;;  %7153 = vmatprep.mubr.msk.f32.mxu1 %vm8270_vm1, %v8271_v63 }
 0x7a5   :  { %7917 = vmatprep.subr.bf16.mxu1 %v8269_v3 }
 0x7a8   :  { %7919 = vmatpush3.bf16.msra.mxu1 %v8360_v24 }
 0x7a9   :  { %7920 = vmatprep.subr.bf16.mxu1 %v8269_v3 }
 0x7ac   :  { %7922 = vmatpush3.bf16.msra.mxu1 %v8404_v39 }
 0x7ad   :  { %7923 = vmatprep.subr.bf16.mxu1 %v8269_v3 }
 0x7b0   :  { %7925 = vmatpush3.bf16.msra.mxu1 %v8424_v47 }
 0x7b1   :  { %7926 = vmatprep.subr.bf16.mxu1 %v8269_v3 }
 0x7b3   :  { %7154 = vmatmul.mubr.f32.vlgmr.msra.gmra.mrb[6].mxu1 %v4169_v59  ;;  %v5310_v59 = vand.u32 4294901760, %v9250_v42 }
 0x7b4   :  { %7928 = vmatpush3.bf16.msra.mxu1 %v8682_v34  ;;  %7172 = vmatprep.mubr.msk.f32.mxu1 %vm8270_vm1, %v8271_v63 }
 0x7b5   :  { %7929 = vmatprep.subr.bf16.mxu1 %v8269_v3 }
 0x7b8   :  { %7931 = vmatpush3.bf16.msra.mxu1 %v8696_v43 }
 0x7b9   :  { %7932 = vmatprep.subr.bf16.mxu1 %v8269_v3 }
 0x7bc   :  { %7934 = vmatpush3.bf16.msra.mxu1 %v8709_v45 }
 0x7bd   :  { %7935 = vmatprep.subr.bf16.mxu1 %v8269_v3 }
 0x7c0   :  { %7937 = vmatpush3.bf16.msra.mxu1 %v8720_v46 }
 0x7c1   :  { %7938 = vmatprep.subr.bf16.mxu1 %v8269_v3 }
 0x7c3   :  { %7173 = vmatmul.mubr.f32.vlgmr.msra.gmra.mrb[6].mxu1 %v4167_v5 }
 0x7c4   :  { %7940 = vmatpush3.bf16.msra.mxu1 %v8334_v16  ;;  %7191 = vmatprep.mubr.msk.f32.mxu1 %vm8270_vm1, %v8271_v63 }
 0x7c5   :  { %7941 = vmatprep.subr.bf16.mxu1 %v8269_v3 }
 0x7c8   :  { %7943 = vmatpush3.bf16.msra.mxu1 %v8360_v24 }
 0x7c9   :  { %7944 = vmatprep.subr.bf16.mxu1 %v8269_v3 }
 0x7cc   :  { %7946 = vmatpush3.bf16.msra.mxu1 %v8404_v39 }
 0x7cd   :  { %7947 = vmatprep.subr.bf16.mxu1 %v8269_v3 }
 0x7d0   :  { %7949 = vmatpush3.bf16.msra.mxu1 %v8424_v47 }
 0x7d1   :  { %8022 = vmatprep.subr.bf16.mxu1 %v8269_v3 }
 0x7d3   :  { %7192 = vmatmul.mubr.f32.vlgmr.msra.gmra.mrb[6].mxu1 %v4167_v5 }
 0x7d4   :  { %7324 = vmatprep.mubr.msk.f32.mxu1 %vm8270_vm1, %v8271_v63 }
 0x8a6   :  { %v4627_v36 = vpop.f32.mrb[6].mxu1 }
 0x8a7   :  { %v4631_v7 = vadd.f32 %v4627_v36, %v8785_v57  ;;  %v7193_v14 = vpop.f32.mrb[7].mxu1  ;;  %v5311_v36 = vsub.f32 %v9250_v42, %v5310_v59 }
 0x8a9   :  { %8241 = vtanh.f32 %v4631_v7  ;;  %v5318_v7 = vsub.f32 %v9255_v17, %v5317_v61  ;;  %v5312_v14 = vand.u32 4294901760, %v5311_v36 }
 0x8b3   :  { %v8242_v15 = vpop.eup %8241 }
 0x8b4   :  { %v4634_v32 = vsel %vm838_vm2, %v8242_v15, 0  ;;  %v5319_v15 = vand.u32 4294901760, %v5318_v7 }
 0x8b5   :  { %v4709_v50 = vand.u32 4294901760, %v4634_v32 }
 0x8b7   :  { %v4710_v1 = vsub.f32 %v4634_v32, %v4709_v50  ;;  %v8044_v32 = vpack.c.bf16 %v5319_v15, %v5312_v14 }
 0x8b9   :  { %v4711_v6 = vand.u32 4294901760, %v4710_v1 }
 0x8bb   :  { %v4712_v20 = vsub.f32 %v4710_v1, %v4711_v6 }
 0x8bd   :  { %v4713_v21 = vand.u32 4294901760, %v4712_v20  ;;  %v8056_v20 = vpack.c.bf16 %v9255_v17, %v9250_v42 }
 0x8bf   :  { %7211 = vmatmul.mubr.f32.vlgmr.msra.gmra.mrb[14].mxu0 %v4713_v21 }
 0x8c0   :  { %7964 = vmatpush3.bf16.msra.mxu0 %v8547_v60  ;;  %7229 = vmatprep.mubr.msk.f32.mxu0 %vm8270_vm1, %v8271_v63  ;;  %v24_v60 = vld [vmem:[%s9336_s1 + $0x60] sm:$0xff] }
 0x8c1   :  { %7965 = vmatprep.subr.bf16.mxu0 %v8269_v3 }
 0x8c4   :  { %7967 = vmatpush3.bf16.msra.mxu0 %v8580_v0 }
 0x8c5   :  { %7968 = vmatprep.subr.bf16.mxu0 %v8269_v3 }
 0x8c8   :  { %7970 = vmatpush3.bf16.msra.mxu0 %v8599_v11  ;;  %v5186_v11 = vand.u32 4294901760, %v24_v60 }
 0x8c9   :  { %7971 = vmatprep.subr.bf16.mxu0 %v8269_v3 }
 0x8cc   :  { %7973 = vmatpush3.bf16.msra.mxu0 %v8603_v12 }
 0x8cd   :  { %7974 = vmatprep.subr.bf16.mxu0 %v8269_v3 }
 0x8cf   :  { %7230 = vmatmul.mubr.f32.vlgmr.msra.gmra.mrb[14].mxu0 %v4709_v50 }
 0x8d0   :  { %7976 = vmatpush3.bf16.msra.mxu0 %v8611_v4  ;;  %7248 = vmatprep.mubr.msk.f32.mxu0 %vm8270_vm1, %v8271_v63 }
 0x8d1   :  { %7977 = vmatprep.subr.bf16.mxu0 %v8269_v3 }
 0x8d4   :  { %7979 = vmatpush3.bf16.msra.mxu0 %v8621_v9 }
 0x8d5   :  { %7980 = vmatprep.subr.bf16.mxu0 %v8269_v3 }
 0x8d8   :  { %7982 = vmatpush3.bf16.msra.mxu0 %v8631_v40  ;;  %v27_v40 = vld [vmem:[%s9336_s1 + $0x78] sm:$0xff] }
 0x8d9   :  { %7983 = vmatprep.subr.bf16.mxu0 %v8269_v3 }
 0x8dc   :  { %7985 = vmatpush3.bf16.msra.mxu0 %v8640_v13  ;;  %v28_v13 = vld [vmem:[%s9336_s1 + $0x80] sm:$0xff] }
 0x8dd   :  { %7986 = vmatprep.subr.bf16.mxu0 %v8269_v3 }
 0x8df   :  { %7249 = vmatmul.mubr.f32.vlgmr.msra.gmra.mrb[14].mxu0 %v4710_v1 }
 0x8e0   :  { %7988 = vmatpush3.bf16.msra.mxu0 %v8334_v16  ;;  %7267 = vmatprep.mubr.msk.f32.mxu0 %vm8270_vm1, %v8271_v63 }
 0x8e1   :  { %7989 = vmatprep.subr.bf16.mxu0 %v8269_v3 }
 0x8e4   :  { %7991 = vmatpush3.bf16.msra.mxu0 %v8360_v24 }
 0x8e5   :  { %7992 = vmatprep.subr.bf16.mxu0 %v8269_v3 }
 0x8e8   :  { %7994 = vmatpush3.bf16.msra.mxu0 %v8404_v39 }
 0x8e9   :  { %7995 = vmatprep.subr.bf16.mxu0 %v8269_v3 }
 0x8ec   :  { %7997 = vmatpush3.bf16.msra.mxu0 %v8424_v47 }
 0x8ed   :  { %7998 = vmatprep.subr.bf16.mxu0 %v8269_v3 }
 0x8ef   :  { %7268 = vmatmul.mubr.f32.vlgmr.msra.gmra.mrb[14].mxu0 %v4711_v6 }
 0x8f0   :  { %8000 = vmatpush3.bf16.msra.mxu0 %v8682_v34  ;;  %7286 = vmatprep.mubr.msk.f32.mxu0 %vm8270_vm1, %v8271_v63  ;;  %v5195_v34 = vand.u32 4294901760, %v27_v40 }
 0x8f1   :  { %8001 = vmatprep.subr.bf16.mxu0 %v8269_v3 }
 0x8f2   :  { %v9243_v41 = vsub.f32 %v27_v40, %v5195_v34 }
 0x8f4   :  { %8003 = vmatpush3.bf16.msra.mxu0 %v8696_v43  ;;  %v5198_v43 = vand.u32 4294901760, %v28_v13  ;;  %v5296_v48 = vand.u32 4294901760, %v9243_v41 }
 0x8f5   :  { %8004 = vmatprep.subr.bf16.mxu0 %v8269_v3 }
 0x8f6   :  { %v9241_v29 = vpack.c.bf16 %v5198_v43, %v5195_v34  ;;  %v9245_v18 = vsub.f32 %v28_v13, %v5198_v43  ;;  %v5297_v52 = vsub.f32 %v9243_v41, %v5296_v48 }
 0x8f8   :  { %8006 = vmatpush3.bf16.msra.mxu0 %v8709_v45  ;;  %v5303_v38 = vand.u32 4294901760, %v9245_v18  ;;  %v5298_v5 = vand.u32 4294901760, %v5297_v52  ;;  %v8053_v6 = vpack.c.bf16 %v9245_v18, %v9243_v41 }
 0x8f9   :  { %8007 = vmatprep.subr.bf16.mxu0 %v8269_v3 }
 0x8fa   :  { %v5304_v55 = vsub.f32 %v9245_v18, %v5303_v38 }
 0x8fc   :  { %8009 = vmatpush3.bf16.msra.mxu0 %v8720_v46  ;;  %v9229_v46 = vsub.f32 %v24_v60, %v5186_v11  ;;  %v5305_v56 = vand.u32 4294901760, %v5304_v55  ;;  %v8077_v60 = vpack.c.bf16 %v5303_v38, %v5296_v48 }
 0x8fd   :  { %8010 = vmatprep.subr.bf16.mxu0 %v8269_v3 }
 0x8fe   :  { %v5275_v35 = vand.u32 4294901760, %v9229_v46  ;;  %v8041_v62 = vpack.c.bf16 %v5305_v56, %v5298_v5 }
 0x8ff   :  { %7287 = vmatmul.mubr.f32.vlgmr.msra.gmra.mrb[14].mxu0 %v4709_v50 }
 0x900   :  { %8012 = vmatpush3.bf16.msra.mxu0 %v8334_v16  ;;  %7305 = vmatprep.mubr.msk.f32.mxu0 %vm8270_vm1, %v8271_v63  ;;  %v23_v16 = vld [vmem:[%s9336_s1 + $0x58] sm:$0xff]  ;;  %v5276_v25 = vsub.f32 %v9229_v46, %v5275_v35 }
 0x901   :  { %8013 = vmatprep.subr.bf16.mxu0 %v8269_v3  ;;  %v5183_v0 = vand.u32 4294901760, %v23_v16 }
 0x902   :  { %v5277_v37 = vand.u32 4294901760, %v5276_v25 }
 0x903   :  { %v9227_v45 = vsub.f32 %v23_v16, %v5183_v0 }
 0x904   :  { %8015 = vmatpush3.bf16.msra.mxu0 %v8360_v24  ;;  %v9207_v24 = vpack.c.bf16 %v5186_v11, %v5183_v0  ;;  %v8080_v0 = vpack.c.bf16 %v5317_v61, %v5310_v59 }
 0x905   :  { %8016 = vmatprep.subr.bf16.mxu0 %v8269_v3  ;;  %v5268_v2 = vand.u32 4294901760, %v9227_v45 }
 0x906   :  { %8024 = vmatpush3.bf16.msra.mxu1 %v9207_v24 }
 0x907   :  { %8025 = vmatprep.subr.bf16.mxu1 %v8269_v3  ;;  %v5269_v23 = vsub.f32 %v9227_v45, %v5268_v2  ;;  %v8071_v21 = vpack.c.bf16 %v5275_v35, %v5268_v2 }
 0x908   :  { %8018 = vmatpush3.bf16.msra.mxu0 %v8404_v39  ;;  %v25_v39 = vld [vmem:[%s9336_s1 + $0x68] sm:$0xff] }
 0x909   :  { %8019 = vmatprep.subr.bf16.mxu0 %v8269_v3  ;;  %v5189_v12 = vand.u32 4294901760, %v25_v39  ;;  %v5270_v26 = vand.u32 4294901760, %v5269_v23 }
 0x90b   :  { %v9231_v57 = vsub.f32 %v25_v39, %v5189_v12  ;;  %v8035_v58 = vpack.c.bf16 %v5277_v37, %v5270_v26 }
 0x90c   :  { %8021 = vmatpush3.bf16.msra.mxu0 %v8424_v47  ;;  %v26_v47 = vld [vmem:[%s9336_s1 + $0x70] sm:$0xff] }
 0x90d   :  { %v5192_v4 = vand.u32 4294901760, %v26_v47  ;;  %v5282_v49 = vand.u32 4294901760, %v9231_v57 }
 0x90f   :  { %7306 = vmatmul.mubr.f32.vlgmr.msra.gmra.mrb[14].mxu0 %v4709_v50  ;;  %v9217_v9 = vpack.c.bf16 %v5192_v4, %v5189_v12  ;;  %v9233_v31 = vsub.f32 %v26_v47, %v5192_v4  ;;  %v5283_v10 = vsub.f32 %v9231_v57, %v5282_v49  ;;  %v8047_v50 = vpack.c.bf16 %v9229_v46, %v9227_v45 }
 0x911   :  { %8027 = vmatpush3.bf16.msra.mxu1 %v9217_v9  ;;  %v5289_v53 = vand.u32 4294901760, %v9233_v31  ;;  %v5284_v27 = vand.u32 4294901760, %v5283_v10  ;;  %v8050_v1 = vpack.c.bf16 %v9233_v31, %v9231_v57 }
 0x912   :  { %8028 = vmatprep.subr.bf16.mxu1 %v8269_v3 }
 0x913   :  { %v5290_v22 = vsub.f32 %v9233_v31, %v5289_v53  ;;  %v8074_v16 = vpack.c.bf16 %v5289_v53, %v5282_v49 }
 0x915   :  { %8030 = vmatpush3.bf16.msra.mxu1 %v9241_v29  ;;  %v5291_v33 = vand.u32 4294901760, %v5290_v22 }
 0x916   :  { %8031 = vmatprep.subr.bf16.mxu1 %v8269_v3 }
 0x917   :  { %v8038_v51 = vpack.c.bf16 %v5291_v33, %v5284_v27 }
 0x919   :  { %8033 = vmatpush3.bf16.msra.mxu1 %v9253_v44 }
 0x91a   :  { %8034 = vmatprep.subr.bf16.mxu1 %v8269_v3 }
 0x9e2   :  { %v5169_v11 = vpop.f32.mrb[14].mxu0 }
 0x9e3   :  { %v5173_v39 = vadd.f32 %v8783_v54, %v5169_v11  ;;  %v7307_v47 = vpop.f32.mrb[15].mxu0  ;;  %v5735_v54 = vld [vmem:[%s9336_s1 + $0x98] ss:$0 sm:$0xff] }
 0x9e5   :  { %8243 = vtanh.f32 %v5173_v39 }
 0x9ef   :  { %v8244_v12 = vpop.eup %8243 }
 0x9f0   :  { %v5180_v4 = vsel %vm838_vm2, %v8244_v12, 0 }
 0x9f1   :  { %v5255_v40 = vand.u32 4294901760, %v5180_v4 }
 0x9f3   :  { %v5256_v13 = vsub.f32 %v5180_v4, %v5255_v40 }
 0x9f5   :  { %v5257_v34 = vand.u32 4294901760, %v5256_v13 }
 0x9f7   :  { %v5258_v43 = vsub.f32 %v5256_v13, %v5257_v34 }
 0x9f9   :  { %v5259_v45 = vand.u32 4294901760, %v5258_v43 }
 0x9fb   :  { %7325 = vmatmul.mubr.f32.vlgmr.msra.gmra.mrb[8].mxu1 %v5259_v45 }
 0x9fc   :  { %8036 = vmatpush3.bf16.msra.mxu1 %v8035_v58  ;;  %7343 = vmatprep.mubr.msk.f32.mxu1 %vm8270_vm1, %v8271_v63 }
 0x9fd   :  { %8037 = vmatprep.subr.bf16.mxu1 %v8269_v3 }
 0xa00   :  { %8039 = vmatpush3.bf16.msra.mxu1 %v8038_v51 }
 0xa01   :  { %8040 = vmatprep.subr.bf16.mxu1 %v8269_v3 }
 0xa04   :  { %8042 = vmatpush3.bf16.msra.mxu1 %v8041_v62 }
 0xa05   :  { %8043 = vmatprep.subr.bf16.mxu1 %v8269_v3 }
 0xa08   :  { %8045 = vmatpush3.bf16.msra.mxu1 %v8044_v32 }
 0xa09   :  { %8046 = vmatprep.subr.bf16.mxu1 %v8269_v3 }
 0xa0b   :  { %7344 = vmatmul.mubr.f32.vlgmr.msra.gmra.mrb[8].mxu1 %v5255_v40 }
 0xa0c   :  { %8048 = vmatpush3.bf16.msra.mxu1 %v8047_v50  ;;  %7362 = vmatprep.mubr.msk.f32.mxu1 %vm8270_vm1, %v8271_v63 }
 0xa0d   :  { %8049 = vmatprep.subr.bf16.mxu1 %v8269_v3 }
 0xa10   :  { %8051 = vmatpush3.bf16.msra.mxu1 %v8050_v1 }
 0xa11   :  { %8052 = vmatprep.subr.bf16.mxu1 %v8269_v3 }
 0xa14   :  { %8054 = vmatpush3.bf16.msra.mxu1 %v8053_v6 }
 0xa15   :  { %8055 = vmatprep.subr.bf16.mxu1 %v8269_v3 }
 0xa18   :  { %8057 = vmatpush3.bf16.msra.mxu1 %v8056_v20 }
 0xa19   :  { %8058 = vmatprep.subr.bf16.mxu1 %v8269_v3 }
 0xa1b   :  { %7363 = vmatmul.mubr.f32.vlgmr.msra.gmra.mrb[8].mxu1 %v5256_v13 }
 0xa1c   :  { %8060 = vmatpush3.bf16.msra.mxu1 %v9207_v24  ;;  %7381 = vmatprep.mubr.msk.f32.mxu1 %vm8270_vm1, %v8271_v63 }
 0xa1d   :  { %8061 = vmatprep.subr.bf16.mxu1 %v8269_v3 }
 0xa20   :  { %8063 = vmatpush3.bf16.msra.mxu1 %v9217_v9 }
 0xa21   :  { %8064 = vmatprep.subr.bf16.mxu1 %v8269_v3 }
 0xa24   :  { %8066 = vmatpush3.bf16.msra.mxu1 %v9241_v29 }
 0xa25   :  { %8067 = vmatprep.subr.bf16.mxu1 %v8269_v3 }
 0xa28   :  { %8069 = vmatpush3.bf16.msra.mxu1 %v9253_v44 }
 0xa29   :  { %8070 = vmatprep.subr.bf16.mxu1 %v8269_v3 }
 0xa2b   :  { %7382 = vmatmul.mubr.f32.vlgmr.msra.gmra.mrb[8].mxu1 %v5257_v34 }
 0xa2c   :  { %8072 = vmatpush3.bf16.msra.mxu1 %v8071_v21  ;;  %7400 = vmatprep.mubr.msk.f32.mxu1 %vm8270_vm1, %v8271_v63 }
 0xa2d   :  { %8073 = vmatprep.subr.bf16.mxu1 %v8269_v3 }
 0xa30   :  { %8075 = vmatpush3.bf16.msra.mxu1 %v8074_v16 }
 0xa31   :  { %8076 = vmatprep.subr.bf16.mxu1 %v8269_v3 }
 0xa34   :  { %8078 = vmatpush3.bf16.msra.mxu1 %v8077_v60 }
 0xa35   :  { %8079 = vmatprep.subr.bf16.mxu1 %v8269_v3 }
 0xa38   :  { %8081 = vmatpush3.bf16.msra.mxu1 %v8080_v0 }
 0xa39   :  { %8082 = vmatprep.subr.bf16.mxu1 %v8269_v3 }
 0xa3b   :  { %7401 = vmatmul.mubr.f32.vlgmr.msra.gmra.mrb[8].mxu1 %v5255_v40 }
 0xa3c   :  { %8084 = vmatpush3.bf16.msra.mxu1 %v9207_v24  ;;  %7419 = vmatprep.mubr.msk.f32.mxu1 %vm8270_vm1, %v8271_v63 }
 0xa3d   :  { %8085 = vmatprep.subr.bf16.mxu1 %v8269_v3 }
 0xa40   :  { %8087 = vmatpush3.bf16.msra.mxu1 %v9217_v9 }
 0xa41   :  { %8088 = vmatprep.subr.bf16.mxu1 %v8269_v3 }
 0xa44   :  { %8090 = vmatpush3.bf16.msra.mxu1 %v9241_v29 }
 0xa45   :  { %8091 = vmatprep.subr.bf16.mxu1 %v8269_v3 }
 0xa48   :  { %8093 = vmatpush3.bf16.msra.mxu1 %v9253_v44 }
 0xa4b   :  { %7420 = vmatmul.mubr.f32.vlgmr.msra.gmra.mrb[8].mxu1 %v5255_v40 }
 0xb1e   :  { %v5715_v63 = vpop.f32.mrb[8].mxu1 }
 0xb1f   :  { %v8094_v24 = vadd.f32 %v5735_v54, %v5715_v63  ;;  %v7421_v46 = vpop.f32.mrb[9].mxu1 }
 0xb21   :  { %5720 = vst.msk [vmem:[#allocation2] sm:$0x3] %vm5719_vm3, %v8094_v24 }
 0xb22   :  { %8256 = shalt.err (!%p8253_p4)
}
 0xb23   :  { %s8257_s13 = scalar_lea.hbm %s9337_s2, 32 }
 0xb24   :  { %p8258_p5 = scmp.ne.s32.totalorder %s9337_s2, %s8257_s13  ;;  %p8261_p6 = scmp.lt.u32.totalorder %s8257_s13, %s9337_s2 }
 0xb26   :  { %p8263_p7 = pnand %p8261_p6, %p8258_p5 }
 0xb28   :  { %8266 = shalt.err (!%p8263_p7)
}
 0xb29   :  { %5730 = dma.vmem_to_hbm [thread:$0]  %s5728_s9, 32, %s9337_s2, [#allocation3]  }
 0xb2a   :  { %8267 = dma.done.wait [#allocation3], 32  }
 0xb2b   :  { %8268 = vsyncadd [#allocation3], 4294967264 }
 0xb2c   :  { %5734 = vsyncpa [#allocation3], 1 }

</bundles_post_ra>
